<compile_context>
chip_gen: v7x
topology: tpu7x:2x2x1
jax: 0.10.0
libtpu: 0.0.40
codegen_flags: <defaults>
</compile_context>

<pallas_src>
import jax
import jax.numpy as jnp
from jax.experimental import pallas as pl
from jax.experimental.pallas import tpu as pltpu

_BN_EPS = 1e-5


# ----------------------------- in-kernel helpers --------------------------- #

def _zero_border(pad_ref, Hh, Wh):
    """Zero only the 1-pixel border of the (Hh+2, Wh+2, Cin) padding scratch."""
    Cin = pad_ref.shape[-1]
    zrow = jnp.zeros((1, Wh + 2, Cin), pad_ref.dtype)
    pad_ref[0:1, :, :] = zrow
    pad_ref[Hh + 1:Hh + 2, :, :] = zrow
    zcol = jnp.zeros((Hh, 1, Cin), pad_ref.dtype)
    pad_ref[1:Hh + 1, 0:1, :] = zcol
    pad_ref[1:Hh + 1, Wh + 1:Wh + 2, :] = zcol


def _conv3x3_from_padded(pad_ref, w_ref, Hh, Wh, Cout):
    """3x3 conv on a zero-padded (Hh+2, Wh+2, Cin) VMEM tile -> (Hh, Wh, Cout) f32."""
    Cin = pad_ref.shape[-1]
    if Cin % 128 == 0:
        # Lane-aligned channels (real UNet configs): fold the 9 taps into one
        # im2col contraction with K = 9*Cin -> ~9x fewer MXU pushes.
        patches = jnp.concatenate(
            [pad_ref[dy:dy + Hh, dx:dx + Wh, :]
             for dy in range(3) for dx in range(3)],
            axis=-1)                                           # (Hh, Wh, 9*Cin)
        w_flat = w_ref[...].reshape(9 * Cin, Cout)             # layout-free (Cin%8==0)
        return jax.lax.dot_general(
            patches, w_flat,
            dimension_numbers=(((2,), (0,)), ((), ())),
            preferred_element_type=jnp.float32)
    # Small-channel fallback: 9 accumulated MXU dots (robust lowering at tiny Cin).
    # TODO(synk): replace the dx=1,2 sublane-misaligned slices with pltpu.roll +
    # border masks (XLU slot) once validated; they currently materialize VMEM copies.
    acc = jnp.zeros((Hh, Wh, Cout), jnp.float32)
    for dy in range(3):
        for dx in range(3):
            acc = acc + jax.lax.dot_general(
                pad_ref[dy:dy + Hh, dx:dx + Wh, :], w_ref[dy, dx],
                dimension_numbers=(((2,), (0,)), ((), ())),
                preferred_element_type=jnp.float32)
    return acc


def _write_bn_partials(st_ref, acc):
    """Per-image [sum, sum_of_squares] of the f32 conv output -> (1, 2, C) output."""
    s = jnp.sum(jnp.sum(acc, axis=0), axis=0, keepdims=True)          # (1, C)
    sq = jnp.sum(jnp.sum(acc * acc, axis=0), axis=0, keepdims=True)   # (1, C)
    st_ref[0, 0:1, :] = s
    st_ref[0, 1:2, :] = sq


# --------------------------------- kernels --------------------------------- #

def _conv1_kernel(p_ref, w_ref, c_ref, st_ref, pad_ref):
    # p_ref  : (1, Hh, Wh, Cin)   pooled input tile (NHWC)
    # w_ref  : (3, 3, Cin, Cout)
    # c_ref  : (1, Hh, Wh, Cout)  conv1 output (pre-BN)
    # st_ref : (1, 2, Cout) f32   BN1 partial stats for this image
    # pad_ref: VMEM (Hh+2, Wh+2, Cin) scratch (zero border, interior rewritten)
    _, Hh, Wh, Cout = c_ref.shape
    _zero_border(pad_ref, Hh, Wh)
    pad_ref[1:Hh + 1, 1:Wh + 1, :] = p_ref[0]
    acc = _conv3x3_from_padded(pad_ref, w_ref, Hh, Wh, Cout)
    c_ref[0] = acc.astype(c_ref.dtype)
    _write_bn_partials(st_ref, acc)


def _bnrelu_conv2_kernel(c1_ref, s_ref, b_ref, w_ref, c_ref, st_ref, pad_ref):
    # c1_ref : (1, Hh, Wh, C1)   conv1 output
    # s_ref  : (1, C1) f32       folded BN1 scale
    # b_ref  : (1, C1) f32       folded BN1 bias
    # w_ref  : (3, 3, C1, Cout)
    # c_ref  : (1, Hh, Wh, Cout) conv2 output (pre-BN)
    # st_ref : (1, 2, Cout) f32  BN2 partial stats
    # pad_ref: VMEM (Hh+2, Wh+2, C1) scratch
    _, Hh, Wh, Cout = c_ref.shape

    # BN1 + ReLU prologue fused on the input tile (c1 is read from HBM once).
    a1 = jnp.maximum(c1_ref[0].astype(jnp.float32) * s_ref[...] + b_ref[...], 0.0)

    _zero_border(pad_ref, Hh, Wh)
    pad_ref[1:Hh + 1, 1:Wh + 1, :] = a1.astype(pad_ref.dtype)

    acc = _conv3x3_from_padded(pad_ref, w_ref, Hh, Wh, Cout)
    c_ref[0] = acc.astype(c_ref.dtype)
    _write_bn_partials(st_ref, acc)


# --------------------------- pallas_call wrappers --------------------------- #

def _cparams():
    # "parallel" shards the batch grid across both TensorCores on v7x (harmless
    # on single-core v5e/v6e).  Raised VMEM cap: v5e's scoped default is only
    # 16 MiB of 128 MiB physical; 64 MiB is within every generation's physical VMEM.
    return pltpu.CompilerParams(dimension_semantics=("parallel",),
                                vmem_limit_bytes=64 * 1024 * 1024)


def _conv1(p, w, out_dtype):
    N, Hh, Wh, Cin = p.shape
    Cout = w.shape[-1]
    # TODO(synk): for large images, add a row-tile grid axis with a 1-row halo
    # (manual DMA) so per-step blocks fit v7x's 64 MiB VMEM; also single-buffer
    # the constant weight spec (pipeline_mode=pl.Buffered(1)) on builds that allow it.
    return pl.pallas_call(
        _conv1_kernel,
        out_shape=(jax.ShapeDtypeStruct((N, Hh, Wh, Cout), out_dtype),
                   jax.ShapeDtypeStruct((N, 2, Cout), jnp.float32)),
        grid=(N,),
        in_specs=[
            pl.BlockSpec((1, Hh, Wh, Cin), lambda n: (n, 0, 0, 0)),
            pl.BlockSpec((3, 3, Cin, Cout), lambda n: (0, 0, 0, 0)),
        ],
        out_specs=(
            pl.BlockSpec((1, Hh, Wh, Cout), lambda n: (n, 0, 0, 0)),
            pl.BlockSpec((1, 2, Cout), lambda n: (n, 0, 0)),
        ),
        scratch_shapes=[pltpu.VMEM((Hh + 2, Wh + 2, Cin), p.dtype)],
        compiler_params=_cparams(),
    )(p, w)


def _bnrelu_conv2(c1, scale, bias, w, out_dtype):
    N, Hh, Wh, C1 = c1.shape
    Cout = w.shape[-1]
    return pl.pallas_call(
        _bnrelu_conv2_kernel,
        out_shape=(jax.ShapeDtypeStruct((N, Hh, Wh, Cout), out_dtype),
                   jax.ShapeDtypeStruct((N, 2, Cout), jnp.float32)),
        grid=(N,),
        in_specs=[
            pl.BlockSpec((1, Hh, Wh, C1), lambda n: (n, 0, 0, 0)),
            pl.BlockSpec((1, C1), lambda n: (0, 0)),
            pl.BlockSpec((1, C1), lambda n: (0, 0)),
            pl.BlockSpec((3, 3, C1, Cout), lambda n: (0, 0, 0, 0)),
        ],
        out_specs=(
            pl.BlockSpec((1, Hh, Wh, Cout), lambda n: (n, 0, 0, 0)),
            pl.BlockSpec((1, 2, Cout), lambda n: (n, 0, 0)),
        ),
        scratch_shapes=[pltpu.VMEM((Hh + 2, Wh + 2, C1), c1.dtype)],
        compiler_params=_cparams(),
    )(c1, scale, bias, w)


# --------------------------------- Down ------------------------------------ #

def _bn_scale_bias(stats, gamma, beta, count):
    # stats: (N, 2, C) per-image [sum, sumsq] partials emitted by the conv kernels.
    # PyTorch BatchNorm2d training-mode forward: batch statistics, biased variance.
    # TODO(synk): switch to a centered/compensated accumulation if N*Hh*Wh grows
    # enough for E[x^2]-E[x]^2 cancellation to matter.
    s = jnp.sum(stats[:, 0, :], axis=0)
    sq = jnp.sum(stats[:, 1, :], axis=0)
    mean = s / count
    var = sq / count - mean * mean
    scale = gamma * jax.lax.rsqrt(var + _BN_EPS)
    bias = beta - mean * scale
    return (scale.astype(jnp.float32).reshape(1, -1),
            bias.astype(jnp.float32).reshape(1, -1))


def down_forward(x_nchw, params, compute_dtype=jnp.bfloat16):
    N, Cin, H, W = x_nchw.shape
    Hh, Wh = H // 2, W // 2
    x = x_nchw[:, :, :2 * Hh, :2 * Wh]             # MaxPool2d(2) floors odd sizes

    # Pool FIRST (full-size input read once), then relayout the 4x-smaller
    # pooled tensor to NHWC and cast to the (bf16) compute dtype.
    pooled = jax.lax.reduce_window(x, -jnp.inf, jax.lax.max,
                                   (1, 1, 2, 2), (1, 1, 2, 2), "VALID")
    p = jnp.transpose(pooled, (0, 2, 3, 1)).astype(compute_dtype)   # (N,Hh,Wh,Cin)

    w1 = params["w1"].astype(compute_dtype)        # (3,3,Cin,C1)
    w2 = params["w2"].astype(compute_dtype)        # (3,3,C1,C2)
    count = N * Hh * Wh

    # K1: conv1 + BN1 partial stats (stats from the f32 accumulator -> exact).
    c1, st1 = _conv1(p, w1, compute_dtype)
    s1, b1 = _bn_scale_bias(st1, params["gamma1"], params["beta1"], count)

    # K2: BN1+ReLU prologue + conv2 + BN2 partial stats.
    c2, st2 = _bnrelu_conv2(c1, s1, b1, w2, compute_dtype)
    s2, b2 = _bn_scale_bias(st2, params["gamma2"], params["beta2"], count)

    # BN2 + ReLU epilogue in plain JAX: XLA fuses it with the NHWC->NCHW
    # relayout, so the result makes exactly one HBM read + one write here.
    y = jnp.maximum(c2.astype(jnp.float32) * s2 + b2, 0.0)
    # TODO(synk): real configs should keep C a multiple of 128 (lane-dense
    # stores); at toy C=8 masked partial stores are unavoidable.
    return jnp.transpose(y, (0, 3, 1, 2)).astype(x_nchw.dtype)


def init_params(key, in_channels, out_channels):
    k1, k2 = jax.random.split(key, 2)
    # Conv biases intentionally omitted: a bias added right before a
    # batch-statistics BatchNorm is cancelled exactly by the mean subtraction.
    return {
        "w1": jax.random.normal(k1, (3, 3, in_channels, out_channels), jnp.float32)
              / jnp.sqrt(in_channels * 9.0),
        "w2": jax.random.normal(k2, (3, 3, out_channels, out_channels), jnp.float32)
              / jnp.sqrt(out_channels * 9.0),
        "gamma1": jnp.ones((out_channels,), jnp.float32),
        "beta1": jnp.zeros((out_channels,), jnp.float32),
        "gamma2": jnp.ones((out_channels,), jnp.float32),
        "beta2": jnp.zeros((out_channels,), jnp.float32),
    }


# ------------------------------ reference ---------------------------------- #

def _reference_forward(x_nchw, params):
    x = jnp.transpose(x_nchw, (0, 2, 3, 1))
    pool = jax.lax.reduce_window(x, -jnp.inf, jax.lax.max,
                                 (1, 2, 2, 1), (1, 2, 2, 1), "VALID")

    def conv_bn_relu(h, w, gamma, beta):
        c = jax.lax.conv_general_dilated(
            h, w, window_strides=(1, 1), padding="SAME",
            dimension_numbers=("NHWC", "HWIO", "NHWC"),
            precision=jax.lax.Precision.HIGHEST)
        mean = jnp.mean(c, axis=(0, 1, 2))
        var = jnp.mean((c - mean) ** 2, axis=(0, 1, 2))
        y = (c - mean) * jax.lax.rsqrt(var + _BN_EPS) * gamma + beta
        return jnp.maximum(y, 0.0)

    h = conv_bn_relu(pool, params["w1"], params["gamma1"], params["beta1"])
    h = conv_bn_relu(h, params["w2"], params["gamma2"], params["beta2"])
    return jnp.transpose(h, (0, 3, 1, 2))


# --------------------------------- main ------------------------------------ #

if __name__ == "__main__":
    key = jax.random.PRNGKey(0)
    kx, kp = jax.random.split(key)

    N, Cin, Cout, H, W = 2, 4, 8, 16, 16
    x = jax.random.normal(kx, (N, Cin, H, W), jnp.float32)     # NCHW input
    params = init_params(kp, Cin, Cout)

    ref = jax.block_until_ready(_reference_forward(x, params))

    # 1) f32 compute path (numerics check; tolerance covers MXU f32 rounding).
    out_f32 = jax.block_until_ready(
        jax.jit(lambda a, p: down_forward(a, p, compute_dtype=jnp.float32))(x, params))
    assert out_f32.shape == (N, Cout, H // 2, W // 2), out_f32.shape
    assert out_f32.dtype == jnp.float32
    assert bool(jnp.allclose(out_f32, ref, atol=2e-2, rtol=2e-2)), \
        float(jnp.max(jnp.abs(out_f32 - ref)))

    # 2) Default production path: bf16 MXU + bf16 intermediates (loose tolerance:
    #    bf16 rounding of inputs/weights/intermediates vs. the f32 reference).
    out_bf16 = jax.block_until_ready(jax.jit(down_forward)(x, params))
    assert out_bf16.shape == (N, Cout, H // 2, W // 2), out_bf16.shape
    assert out_bf16.dtype == jnp.float32
    assert bool(jnp.allclose(out_bf16, ref, atol=1e-1, rtol=1e-1)), \
        float(jnp.max(jnp.abs(out_bf16 - ref)))

    print("KERNEL_OK")
</pallas_src>

<mosaic_0001>
module attributes {stable_mosaic.version = 11 : i64} {
  func.func @_conv1_kernel(%arg0: i32, %arg1: memref<1x8x8x4xf32, #tpu.memory_space<vmem>>, %arg2: memref<3x3x4x8xf32, #tpu.memory_space<vmem>>, %arg3: memref<1x8x8x8xf32, #tpu.memory_space<vmem>>, %arg4: memref<1x2x8xf32, #tpu.memory_space<vmem>>, %arg5: memref<10x10x4xf32, #tpu.memory_space<vmem>>) attributes {dimension_semantics = [#tpu.dimension_semantics<parallel>], iteration_bounds = array<i64: 2>, scalar_prefetch = 0 : i64, scratch_operands = 1 : i64, tpu.core_type = #tpu.core_type<tc>, window_params = [{transform_indices = @transform_0, window_bounds = array<i64: 1, 8, 8, 4>}, {pipeline_mode = #tpu.pipeline_mode<synchronous>, transform_indices = @transform_1, window_bounds = array<i64: 3, 3, 4, 8>}, {transform_indices = @transform_2, window_bounds = array<i64: 1, 8, 8, 8>}, {transform_indices = @transform_3, window_bounds = array<i64: 1, 2, 8>}]} {
    %cst = arith.constant 0.000000e+00 : f32
    %0 = vector.broadcast %cst : f32 to vector<1x10x4xf32>
    %c0 = arith.constant 0 : index
    %c0_0 = arith.constant 0 : index
    %c0_1 = arith.constant 0 : index
    %1 = vector.load %arg5[%c0, %c0_0, %c0_1] : memref<10x10x4xf32, #tpu.memory_space<vmem>>, vector<1x10x4xf32>
    tpu.vector_store %arg5[%c0, %c0_0, %c0_1], %0 {strides = array<i32>} : memref<10x10x4xf32, #tpu.memory_space<vmem>>, vector<1x10x4xf32>,
    %c9 = arith.constant 9 : index
    %c0_2 = arith.constant 0 : index
    %c0_3 = arith.constant 0 : index
    %2 = vector.load %arg5[%c9, %c0_2, %c0_3] : memref<10x10x4xf32, #tpu.memory_space<vmem>>, vector<1x10x4xf32>
    tpu.vector_store %arg5[%c9, %c0_2, %c0_3], %0 {strides = array<i32>} : memref<10x10x4xf32, #tpu.memory_space<vmem>>, vector<1x10x4xf32>,
    %cst_4 = arith.constant 0.000000e+00 : f32
    %3 = vector.broadcast %cst_4 : f32 to vector<8x1x4xf32>
    %c1 = arith.constant 1 : index
    %c0_5 = arith.constant 0 : index
    %c0_6 = arith.constant 0 : index
    %4 = vector.load %arg5[%c1, %c0_5, %c0_6] : memref<10x10x4xf32, #tpu.memory_space<vmem>>, vector<8x1x4xf32>
    tpu.vector_store %arg5[%c1, %c0_5, %c0_6], %3 {strides = array<i32>} : memref<10x10x4xf32, #tpu.memory_space<vmem>>, vector<8x1x4xf32>,
    %c1_7 = arith.constant 1 : index
    %c9_8 = arith.constant 9 : index
    %c0_9 = arith.constant 0 : index
    %5 = vector.load %arg5[%c1_7, %c9_8, %c0_9] : memref<10x10x4xf32, #tpu.memory_space<vmem>>, vector<8x1x4xf32>
    tpu.vector_store %arg5[%c1_7, %c9_8, %c0_9], %3 {strides = array<i32>} : memref<10x10x4xf32, #tpu.memory_space<vmem>>, vector<8x1x4xf32>,
    %c0_10 = arith.constant 0 : index
    %c0_11 = arith.constant 0 : index
    %c0_12 = arith.constant 0 : index
    %c0_13 = arith.constant 0 : index
    %6 = vector.load %arg1[%c0_10, %c0_11, %c0_12, %c0_13] : memref<1x8x8x4xf32, #tpu.memory_space<vmem>>, vector<1x8x8x4xf32>
    %7 = vector.shape_cast %6 : vector<1x8x8x4xf32> to vector<8x8x4xf32>
    %c1_14 = arith.constant 1 : index
    %c1_15 = arith.constant 1 : index
    %c0_16 = arith.constant 0 : index
    %8 = vector.load %arg5[%c1_14, %c1_15, %c0_16] : memref<10x10x4xf32, #tpu.memory_space<vmem>>, vector<8x8x4xf32>
    tpu.vector_store %arg5[%c1_14, %c1_15, %c0_16], %7 {strides = array<i32>} : memref<10x10x4xf32, #tpu.memory_space<vmem>>, vector<8x8x4xf32>,
    %cst_17 = arith.constant 0.000000e+00 : f32
    %9 = vector.broadcast %cst_17 : f32 to vector<8x8x8xf32>
    %c0_18 = arith.constant 0 : index
    %c0_19 = arith.constant 0 : index
    %c0_20 = arith.constant 0 : index
    %10 = vector.load %arg5[%c0_18, %c0_19, %c0_20] : memref<10x10x4xf32, #tpu.memory_space<vmem>>, vector<8x8x4xf32>
    %c0_21 = arith.constant 0 : index
    %c0_22 = arith.constant 0 : index
    %c0_23 = arith.constant 0 : index
    %c0_24 = arith.constant 0 : index
    %11 = vector.load %arg2[%c0_21, %c0_22, %c0_23, %c0_24] : memref<3x3x4x8xf32, #tpu.memory_space<vmem>>, vector<1x1x4x8xf32>
    %12 = vector.shape_cast %11 : vector<1x1x4x8xf32> to vector<4x8xf32>
    %cst_25 = arith.constant dense<0.000000e+00> : vector<8x8x8xf32>
    %13 = tpu.matmul %10, %12, %cst_25 {dimension_numbers = #tpu.dot_dimension_numbers<[2], [0], [0, 1], [1], [0, 0, 0, 1, 1, 1], [], []>} : vector<8x8x4xf32>, vector<4x8xf32>, vector<8x8x8xf32> -> vector<8x8x8xf32>
    %14 = arith.addf %9, %13 : vector<8x8x8xf32>
    %c0_26 = arith.constant 0 : index
    %c1_27 = arith.constant 1 : index
    %c0_28 = arith.constant 0 : index
    %15 = vector.load %arg5[%c0_26, %c1_27, %c0_28] : memref<10x10x4xf32, #tpu.memory_space<vmem>>, vector<8x8x4xf32>
    %c0_29 = arith.constant 0 : index
    %c1_30 = arith.constant 1 : index
    %c0_31 = arith.constant 0 : index
    %c0_32 = arith.constant 0 : index
    %16 = vector.load %arg2[%c0_29, %c1_30, %c0_31, %c0_32] : memref<3x3x4x8xf32, #tpu.memory_space<vmem>>, vector<1x1x4x8xf32>
    %17 = vector.shape_cast %16 : vector<1x1x4x8xf32> to vector<4x8xf32>
    %cst_33 = arith.constant dense<0.000000e+00> : vector<8x8x8xf32>
    %18 = tpu.matmul %15, %17, %cst_33 {dimension_numbers = #tpu.dot_dimension_numbers<[2], [0], [0, 1], [1], [0, 0, 0, 1, 1, 1], [], []>} : vector<8x8x4xf32>, vector<4x8xf32>, vector<8x8x8xf32> -> vector<8x8x8xf32>
    %19 = arith.addf %14, %18 : vector<8x8x8xf32>
    %c0_34 = arith.constant 0 : index
    %c2 = arith.constant 2 : index
    %c0_35 = arith.constant 0 : index
    %20 = vector.load %arg5[%c0_34, %c2, %c0_35] : memref<10x10x4xf32, #tpu.memory_space<vmem>>, vector<8x8x4xf32>
    %c0_36 = arith.constant 0 : index
    %c2_37 = arith.constant 2 : index
    %c0_38 = arith.constant 0 : index
    %c0_39 = arith.constant 0 : index
    %21 = vector.load %arg2[%c0_36, %c2_37, %c0_38, %c0_39] : memref<3x3x4x8xf32, #tpu.memory_space<vmem>>, vector<1x1x4x8xf32>
    %22 = vector.shape_cast %21 : vector<1x1x4x8xf32> to vector<4x8xf32>
    %cst_40 = arith.constant dense<0.000000e+00> : vector<8x8x8xf32>
    %23 = tpu.matmul %20, %22, %cst_40 {dimension_numbers = #tpu.dot_dimension_numbers<[2], [0], [0, 1], [1], [0, 0, 0, 1, 1, 1], [], []>} : vector<8x8x4xf32>, vector<4x8xf32>, vector<8x8x8xf32> -> vector<8x8x8xf32>
    %24 = arith.addf %19, %23 : vector<8x8x8xf32>
    %c1_41 = arith.constant 1 : index
    %c0_42 = arith.constant 0 : index
    %c0_43 = arith.constant 0 : index
    %25 = vector.load %arg5[%c1_41, %c0_42, %c0_43] : memref<10x10x4xf32, #tpu.memory_space<vmem>>, vector<8x8x4xf32>
    %c1_44 = arith.constant 1 : index
    %c0_45 = arith.constant 0 : index
    %c0_46 = arith.constant 0 : index
    %c0_47 = arith.constant 0 : index
    %26 = vector.load %arg2[%c1_44, %c0_45, %c0_46, %c0_47] : memref<3x3x4x8xf32, #tpu.memory_space<vmem>>, vector<1x1x4x8xf32>
    %27 = vector.shape_cast %26 : vector<1x1x4x8xf32> to vector<4x8xf32>
    %cst_48 = arith.constant dense<0.000000e+00> : vector<8x8x8xf32>
    %28 = tpu.matmul %25, %27, %cst_48 {dimension_numbers = #tpu.dot_dimension_numbers<[2], [0], [0, 1], [1], [0, 0, 0, 1, 1, 1], [], []>} : vector<8x8x4xf32>, vector<4x8xf32>, vector<8x8x8xf32> -> vector<8x8x8xf32>
    %29 = arith.addf %24, %28 : vector<8x8x8xf32>
    %c1_49 = arith.constant 1 : index
    %c1_50 = arith.constant 1 : index
    %c0_51 = arith.constant 0 : index
    %30 = vector.load %arg5[%c1_49, %c1_50, %c0_51] : memref<10x10x4xf32, #tpu.memory_space<vmem>>, vector<8x8x4xf32>
    %c1_52 = arith.constant 1 : index
    %c1_53 = arith.constant 1 : index
    %c0_54 = arith.constant 0 : index
    %c0_55 = arith.constant 0 : index
    %31 = vector.load %arg2[%c1_52, %c1_53, %c0_54, %c0_55] : memref<3x3x4x8xf32, #tpu.memory_space<vmem>>, vector<1x1x4x8xf32>
    %32 = vector.shape_cast %31 : vector<1x1x4x8xf32> to vector<4x8xf32>
    %cst_56 = arith.constant dense<0.000000e+00> : vector<8x8x8xf32>
    %33 = tpu.matmul %30, %32, %cst_56 {dimension_numbers = #tpu.dot_dimension_numbers<[2], [0], [0, 1], [1], [0, 0, 0, 1, 1, 1], [], []>} : vector<8x8x4xf32>, vector<4x8xf32>, vector<8x8x8xf32> -> vector<8x8x8xf32>
    %34 = arith.addf %29, %33 : vector<8x8x8xf32>
    %c1_57 = arith.constant 1 : index
    %c2_58 = arith.constant 2 : index
    %c0_59 = arith.constant 0 : index
    %35 = vector.load %arg5[%c1_57, %c2_58, %c0_59] : memref<10x10x4xf32, #tpu.memory_space<vmem>>, vector<8x8x4xf32>
    %c1_60 = arith.constant 1 : index
    %c2_61 = arith.constant 2 : index
    %c0_62 = arith.constant 0 : index
    %c0_63 = arith.constant 0 : index
    %36 = vector.load %arg2[%c1_60, %c2_61, %c0_62, %c0_63] : memref<3x3x4x8xf32, #tpu.memory_space<vmem>>, vector<1x1x4x8xf32>
    %37 = vector.shape_cast %36 : vector<1x1x4x8xf32> to vector<4x8xf32>
    %cst_64 = arith.constant dense<0.000000e+00> : vector<8x8x8xf32>
    %38 = tpu.matmul %35, %37, %cst_64 {dimension_numbers = #tpu.dot_dimension_numbers<[2], [0], [0, 1], [1], [0, 0, 0, 1, 1, 1], [], []>} : vector<8x8x4xf32>, vector<4x8xf32>, vector<8x8x8xf32> -> vector<8x8x8xf32>
    %39 = arith.addf %34, %38 : vector<8x8x8xf32>
    %c2_65 = arith.constant 2 : index
    %c0_66 = arith.constant 0 : index
    %c0_67 = arith.constant 0 : index
    %40 = vector.load %arg5[%c2_65, %c0_66, %c0_67] : memref<10x10x4xf32, #tpu.memory_space<vmem>>, vector<8x8x4xf32>
    %c2_68 = arith.constant 2 : index
    %c0_69 = arith.constant 0 : index
    %c0_70 = arith.constant 0 : index
    %c0_71 = arith.constant 0 : index
    %41 = vector.load %arg2[%c2_68, %c0_69, %c0_70, %c0_71] : memref<3x3x4x8xf32, #tpu.memory_space<vmem>>, vector<1x1x4x8xf32>
    %42 = vector.shape_cast %41 : vector<1x1x4x8xf32> to vector<4x8xf32>
    %cst_72 = arith.constant dense<0.000000e+00> : vector<8x8x8xf32>
    %43 = tpu.matmul %40, %42, %cst_72 {dimension_numbers = #tpu.dot_dimension_numbers<[2], [0], [0, 1], [1], [0, 0, 0, 1, 1, 1], [], []>} : vector<8x8x4xf32>, vector<4x8xf32>, vector<8x8x8xf32> -> vector<8x8x8xf32>
    %44 = arith.addf %39, %43 : vector<8x8x8xf32>
    %c2_73 = arith.constant 2 : index
    %c1_74 = arith.constant 1 : index
    %c0_75 = arith.constant 0 : index
    %45 = vector.load %arg5[%c2_73, %c1_74, %c0_75] : memref<10x10x4xf32, #tpu.memory_space<vmem>>, vector<8x8x4xf32>
    %c2_76 = arith.constant 2 : index
    %c1_77 = arith.constant 1 : index
    %c0_78 = arith.constant 0 : index
    %c0_79 = arith.constant 0 : index
    %46 = vector.load %arg2[%c2_76, %c1_77, %c0_78, %c0_79] : memref<3x3x4x8xf32, #tpu.memory_space<vmem>>, vector<1x1x4x8xf32>
    %47 = vector.shape_cast %46 : vector<1x1x4x8xf32> to vector<4x8xf32>
    %cst_80 = arith.constant dense<0.000000e+00> : vector<8x8x8xf32>
    %48 = tpu.matmul %45, %47, %cst_80 {dimension_numbers = #tpu.dot_dimension_numbers<[2], [0], [0, 1], [1], [0, 0, 0, 1, 1, 1], [], []>} : vector<8x8x4xf32>, vector<4x8xf32>, vector<8x8x8xf32> -> vector<8x8x8xf32>
    %49 = arith.addf %44, %48 : vector<8x8x8xf32>
    %c2_81 = arith.constant 2 : index
    %c2_82 = arith.constant 2 : index
    %c0_83 = arith.constant 0 : index
    %50 = vector.load %arg5[%c2_81, %c2_82, %c0_83] : memref<10x10x4xf32, #tpu.memory_space<vmem>>, vector<8x8x4xf32>
    %c2_84 = arith.constant 2 : index
    %c2_85 = arith.constant 2 : index
    %c0_86 = arith.constant 0 : index
    %c0_87 = arith.constant 0 : index
    %51 = vector.load %arg2[%c2_84, %c2_85, %c0_86, %c0_87] : memref<3x3x4x8xf32, #tpu.memory_space<vmem>>, vector<1x1x4x8xf32>
    %52 = vector.shape_cast %51 : vector<1x1x4x8xf32> to vector<4x8xf32>
    %cst_88 = arith.constant dense<0.000000e+00> : vector<8x8x8xf32>
    %53 = tpu.matmul %50, %52, %cst_88 {dimension_numbers = #tpu.dot_dimension_numbers<[2], [0], [0, 1], [1], [0, 0, 0, 1, 1, 1], [], []>} : vector<8x8x4xf32>, vector<4x8xf32>, vector<8x8x8xf32> -> vector<8x8x8xf32>
    %54 = arith.addf %49, %53 : vector<8x8x8xf32>
    %c0_89 = arith.constant 0 : index
    %c0_90 = arith.constant 0 : index
    %c0_91 = arith.constant 0 : index
    %c0_92 = arith.constant 0 : index
    %55 = vector.load %arg3[%c0_89, %c0_90, %c0_91, %c0_92] : memref<1x8x8x8xf32, #tpu.memory_space<vmem>>, vector<1x8x8x8xf32>
    %56 = vector.shape_cast %55 : vector<1x8x8x8xf32> to vector<8x8x8xf32>
    %57 = vector.shape_cast %54 : vector<8x8x8xf32> to vector<1x8x8x8xf32>
    tpu.vector_store %arg3[%c0_89, %c0_90, %c0_91, %c0_92], %57 {strides = array<i32>} : memref<1x8x8x8xf32, #tpu.memory_space<vmem>>, vector<1x8x8x8xf32>,
    %cst_93 = arith.constant dense<0.000000e+00> : vector<8x8xf32>
    %58 = vector.multi_reduction <add>, %54, %cst_93 [0] : vector<8x8x8xf32> to vector<8x8xf32>
    %cst_94 = arith.constant dense<0.000000e+00> : vector<8xf32>
    %59 = vector.multi_reduction <add>, %58, %cst_94 [0] : vector<8x8xf32> to vector<8xf32>
    %60 = vector.shape_cast %59 : vector<8xf32> to vector<1x8xf32>
    %61 = arith.mulf %54, %54 : vector<8x8x8xf32>
    %cst_95 = arith.constant dense<0.000000e+00> : vector<8x8xf32>
    %62 = vector.multi_reduction <add>, %61, %cst_95 [0] : vector<8x8x8xf32> to vector<8x8xf32>
    %cst_96 = arith.constant dense<0.000000e+00> : vector<8xf32>
    %63 = vector.multi_reduction <add>, %62, %cst_96 [0] : vector<8x8xf32> to vector<8xf32>
    %64 = vector.shape_cast %63 : vector<8xf32> to vector<1x8xf32>
    %c0_97 = arith.constant 0 : index
    %c0_98 = arith.constant 0 : index
    %c0_99 = arith.constant 0 : index
    %65 = vector.load %arg4[%c0_97, %c0_98, %c0_99] : memref<1x2x8xf32, #tpu.memory_space<vmem>>, vector<1x1x8xf32>
    %66 = vector.shape_cast %65 : vector<1x1x8xf32> to vector<1x8xf32>
    %67 = vector.shape_cast %60 : vector<1x8xf32> to vector<1x1x8xf32>
    tpu.vector_store %arg4[%c0_97, %c0_98, %c0_99], %67 {strides = array<i32>} : memref<1x2x8xf32, #tpu.memory_space<vmem>>, vector<1x1x8xf32>,
    %c0_100 = arith.constant 0 : index
    %c1_101 = arith.constant 1 : index
    %c0_102 = arith.constant 0 : index
    %68 = vector.load %arg4[%c0_100, %c1_101, %c0_102] : memref<1x2x8xf32, #tpu.memory_space<vmem>>, vector<1x1x8xf32>
    %69 = vector.shape_cast %68 : vector<1x1x8xf32> to vector<1x8xf32>
    %70 = vector.shape_cast %64 : vector<1x8xf32> to vector<1x1x8xf32>
    tpu.vector_store %arg4[%c0_100, %c1_101, %c0_102], %70 {strides = array<i32>} : memref<1x2x8xf32, #tpu.memory_space<vmem>>, vector<1x1x8xf32>,
    return
  }
  func.func @transform_0(%arg0: i32) -> (i32, i32, i32, i32) {
    %c0_i32 = arith.constant 0 : i32
    %c0_i32_0 = arith.constant 0 : i32
    %c0_i32_1 = arith.constant 0 : i32
    %c0_i32_2 = arith.constant 0 : i32
    return %arg0, %c0_i32, %c0_i32_0, %c0_i32_1 : i32, i32, i32, i32
  }
  func.func @transform_1(%arg0: i32) -> (i32, i32, i32, i32) {
    %c0_i32 = arith.constant 0 : i32
    %c0_i32_0 = arith.constant 0 : i32
    %c0_i32_1 = arith.constant 0 : i32
    %c0_i32_2 = arith.constant 0 : i32
    %c0_i32_3 = arith.constant 0 : i32
    return %c0_i32, %c0_i32_0, %c0_i32_1, %c0_i32_2 : i32, i32, i32, i32
  }
  func.func @transform_2(%arg0: i32) -> (i32, i32, i32, i32) {
    %c0_i32 = arith.constant 0 : i32
    %c0_i32_0 = arith.constant 0 : i32
    %c0_i32_1 = arith.constant 0 : i32
    %c0_i32_2 = arith.constant 0 : i32
    return %arg0, %c0_i32, %c0_i32_0, %c0_i32_1 : i32, i32, i32, i32
  }
  func.func @transform_3(%arg0: i32) -> (i32, i32, i32) {
    %c0_i32 = arith.constant 0 : i32
    %c0_i32_0 = arith.constant 0 : i32
    %c0_i32_1 = arith.constant 0 : i32
    return %arg0, %c0_i32, %c0_i32_0 : i32, i32, i32
  }
}

module attributes {stable_mosaic.version = 11 : i64} {
  func.func @_bnrelu_conv2_kernel(%arg0: i32, %arg1: memref<1x8x8x8xf32, #tpu.memory_space<vmem>>, %arg2: memref<1x8xf32, #tpu.memory_space<vmem>>, %arg3: memref<1x8xf32, #tpu.memory_space<vmem>>, %arg4: memref<3x3x8x8xf32, #tpu.memory_space<vmem>>, %arg5: memref<1x8x8x8xf32, #tpu.memory_space<vmem>>, %arg6: memref<1x2x8xf32, #tpu.memory_space<vmem>>, %arg7: memref<10x10x8xf32, #tpu.memory_space<vmem>>) attributes {dimension_semantics = [#tpu.dimension_semantics<parallel>], iteration_bounds = array<i64: 2>, scalar_prefetch = 0 : i64, scratch_operands = 1 : i64, tpu.core_type = #tpu.core_type<tc>, window_params = [{transform_indices = @transform_0, window_bounds = array<i64: 1, 8, 8, 8>}, {pipeline_mode = #tpu.pipeline_mode<synchronous>, transform_indices = @transform_1, window_bounds = array<i64: 1, 8>}, {pipeline_mode = #tpu.pipeline_mode<synchronous>, transform_indices = @transform_2, window_bounds = array<i64: 1, 8>}, {pipeline_mode = #tpu.pipeline_mode<synchronous>, transform_indices = @transform_3, window_bounds = array<i64: 3, 3, 8, 8>}, {transform_indices = @transform_4, window_bounds = array<i64: 1, 8, 8, 8>}, {transform_indices = @transform_5, window_bounds = array<i64: 1, 2, 8>}]} {
    %c0 = arith.constant 0 : index
    %c0_0 = arith.constant 0 : index
    %c0_1 = arith.constant 0 : index
    %c0_2 = arith.constant 0 : index
    %0 = vector.load %arg1[%c0, %c0_0, %c0_1, %c0_2] : memref<1x8x8x8xf32, #tpu.memory_space<vmem>>, vector<1x8x8x8xf32>
    %1 = vector.shape_cast %0 : vector<1x8x8x8xf32> to vector<8x8x8xf32>
    %c0_3 = arith.constant 0 : index
    %c0_4 = arith.constant 0 : index
    %2 = vector.load %arg2[%c0_3, %c0_4] : memref<1x8xf32, #tpu.memory_space<vmem>>, vector<1x8xf32>
    %3 = vector.shape_cast %2 : vector<1x8xf32> to vector<1x1x8xf32>
    %4 = vector.broadcast %3 : vector<1x1x8xf32> to vector<8x8x8xf32>
    %5 = arith.mulf %1, %4 : vector<8x8x8xf32>
    %c0_5 = arith.constant 0 : index
    %c0_6 = arith.constant 0 : index
    %6 = vector.load %arg3[%c0_5, %c0_6] : memref<1x8xf32, #tpu.memory_space<vmem>>, vector<1x8xf32>
    %7 = vector.shape_cast %6 : vector<1x8xf32> to vector<1x1x8xf32>
    %8 = vector.broadcast %7 : vector<1x1x8xf32> to vector<8x8x8xf32>
    %9 = arith.addf %5, %8 : vector<8x8x8xf32>
    %cst = arith.constant 0.000000e+00 : f32
    %10 = vector.broadcast %cst : f32 to vector<8x8x8xf32>
    %11 = arith.maximumf %9, %10 : vector<8x8x8xf32>
    %cst_7 = arith.constant 0.000000e+00 : f32
    %12 = vector.broadcast %cst_7 : f32 to vector<1x10x8xf32>
    %c0_8 = arith.constant 0 : index
    %c0_9 = arith.constant 0 : index
    %c0_10 = arith.constant 0 : index
    %13 = vector.load %arg7[%c0_8, %c0_9, %c0_10] : memref<10x10x8xf32, #tpu.memory_space<vmem>>, vector<1x10x8xf32>
    tpu.vector_store %arg7[%c0_8, %c0_9, %c0_10], %12 {strides = array<i32>} : memref<10x10x8xf32, #tpu.memory_space<vmem>>, vector<1x10x8xf32>,
    %c9 = arith.constant 9 : index
    %c0_11 = arith.constant 0 : index
    %c0_12 = arith.constant 0 : index
    %14 = vector.load %arg7[%c9, %c0_11, %c0_12] : memref<10x10x8xf32, #tpu.memory_space<vmem>>, vector<1x10x8xf32>
    tpu.vector_store %arg7[%c9, %c0_11, %c0_12], %12 {strides = array<i32>} : memref<10x10x8xf32, #tpu.memory_space<vmem>>, vector<1x10x8xf32>,
    %cst_13 = arith.constant 0.000000e+00 : f32
    %15 = vector.broadcast %cst_13 : f32 to vector<8x1x8xf32>
    %c1 = arith.constant 1 : index
    %c0_14 = arith.constant 0 : index
    %c0_15 = arith.constant 0 : index
    %16 = vector.load %arg7[%c1, %c0_14, %c0_15] : memref<10x10x8xf32, #tpu.memory_space<vmem>>, vector<8x1x8xf32>
    tpu.vector_store %arg7[%c1, %c0_14, %c0_15], %15 {strides = array<i32>} : memref<10x10x8xf32, #tpu.memory_space<vmem>>, vector<8x1x8xf32>,
    %c1_16 = arith.constant 1 : index
    %c9_17 = arith.constant 9 : index
    %c0_18 = arith.constant 0 : index
    %17 = vector.load %arg7[%c1_16, %c9_17, %c0_18] : memref<10x10x8xf32, #tpu.memory_space<vmem>>, vector<8x1x8xf32>
    tpu.vector_store %arg7[%c1_16, %c9_17, %c0_18], %15 {strides = array<i32>} : memref<10x10x8xf32, #tpu.memory_space<vmem>>, vector<8x1x8xf32>,
    %c1_19 = arith.constant 1 : index
    %c1_20 = arith.constant 1 : index
    %c0_21 = arith.constant 0 : index
    %18 = vector.load %arg7[%c1_19, %c1_20, %c0_21] : memref<10x10x8xf32, #tpu.memory_space<vmem>>, vector<8x8x8xf32>
    tpu.vector_store %arg7[%c1_19, %c1_20, %c0_21], %11 {strides = array<i32>} : memref<10x10x8xf32, #tpu.memory_space<vmem>>, vector<8x8x8xf32>,
    %cst_22 = arith.constant 0.000000e+00 : f32
    %19 = vector.broadcast %cst_22 : f32 to vector<8x8x8xf32>
    %c0_23 = arith.constant 0 : index
    %c0_24 = arith.constant 0 : index
    %c0_25 = arith.constant 0 : index
    %20 = vector.load %arg7[%c0_23, %c0_24, %c0_25] : memref<10x10x8xf32, #tpu.memory_space<vmem>>, vector<8x8x8xf32>
    %c0_26 = arith.constant 0 : index
    %c0_27 = arith.constant 0 : index
    %c0_28 = arith.constant 0 : index
    %c0_29 = arith.constant 0 : index
    %21 = vector.load %arg4[%c0_26, %c0_27, %c0_28, %c0_29] : memref<3x3x8x8xf32, #tpu.memory_space<vmem>>, vector<1x1x8x8xf32>
    %22 = vector.shape_cast %21 : vector<1x1x8x8xf32> to vector<8x8xf32>
    %cst_30 = arith.constant dense<0.000000e+00> : vector<8x8x8xf32>
    %23 = tpu.matmul %20, %22, %cst_30 {dimension_numbers = #tpu.dot_dimension_numbers<[2], [0], [0, 1], [1], [0, 0, 0, 1, 1, 1], [], []>} : vector<8x8x8xf32>, vector<8x8xf32>, vector<8x8x8xf32> -> vector<8x8x8xf32>
    %24 = arith.addf %19, %23 : vector<8x8x8xf32>
    %c0_31 = arith.constant 0 : index
    %c1_32 = arith.constant 1 : index
    %c0_33 = arith.constant 0 : index
    %25 = vector.load %arg7[%c0_31, %c1_32, %c0_33] : memref<10x10x8xf32, #tpu.memory_space<vmem>>, vector<8x8x8xf32>
    %c0_34 = arith.constant 0 : index
    %c1_35 = arith.constant 1 : index
    %c0_36 = arith.constant 0 : index
    %c0_37 = arith.constant 0 : index
    %26 = vector.load %arg4[%c0_34, %c1_35, %c0_36, %c0_37] : memref<3x3x8x8xf32, #tpu.memory_space<vmem>>, vector<1x1x8x8xf32>
    %27 = vector.shape_cast %26 : vector<1x1x8x8xf32> to vector<8x8xf32>
    %cst_38 = arith.constant dense<0.000000e+00> : vector<8x8x8xf32>
    %28 = tpu.matmul %25, %27, %cst_38 {dimension_numbers = #tpu.dot_dimension_numbers<[2], [0], [0, 1], [1], [0, 0, 0, 1, 1, 1], [], []>} : vector<8x8x8xf32>, vector<8x8xf32>, vector<8x8x8xf32> -> vector<8x8x8xf32>
    %29 = arith.addf %24, %28 : vector<8x8x8xf32>
    %c0_39 = arith.constant 0 : index
    %c2 = arith.constant 2 : index
    %c0_40 = arith.constant 0 : index
    %30 = vector.load %arg7[%c0_39, %c2, %c0_40] : memref<10x10x8xf32, #tpu.memory_space<vmem>>, vector<8x8x8xf32>
    %c0_41 = arith.constant 0 : index
    %c2_42 = arith.constant 2 : index
    %c0_43 = arith.constant 0 : index
    %c0_44 = arith.constant 0 : index
    %31 = vector.load %arg4[%c0_41, %c2_42, %c0_43, %c0_44] : memref<3x3x8x8xf32, #tpu.memory_space<vmem>>, vector<1x1x8x8xf32>
    %32 = vector.shape_cast %31 : vector<1x1x8x8xf32> to vector<8x8xf32>
    %cst_45 = arith.constant dense<0.000000e+00> : vector<8x8x8xf32>
    %33 = tpu.matmul %30, %32, %cst_45 {dimension_numbers = #tpu.dot_dimension_numbers<[2], [0], [0, 1], [1], [0, 0, 0, 1, 1, 1], [], []>} : vector<8x8x8xf32>, vector<8x8xf32>, vector<8x8x8xf32> -> vector<8x8x8xf32>
    %34 = arith.addf %29, %33 : vector<8x8x8xf32>
    %c1_46 = arith.constant 1 : index
    %c0_47 = arith.constant 0 : index
    %c0_48 = arith.constant 0 : index
    %35 = vector.load %arg7[%c1_46, %c0_47, %c0_48] : memref<10x10x8xf32, #tpu.memory_space<vmem>>, vector<8x8x8xf32>
    %c1_49 = arith.constant 1 : index
    %c0_50 = arith.constant 0 : index
    %c0_51 = arith.constant 0 : index
    %c0_52 = arith.constant 0 : index
    %36 = vector.load %arg4[%c1_49, %c0_50, %c0_51, %c0_52] : memref<3x3x8x8xf32, #tpu.memory_space<vmem>>, vector<1x1x8x8xf32>
    %37 = vector.shape_cast %36 : vector<1x1x8x8xf32> to vector<8x8xf32>
    %cst_53 = arith.constant dense<0.000000e+00> : vector<8x8x8xf32>
    %38 = tpu.matmul %35, %37, %cst_53 {dimension_numbers = #tpu.dot_dimension_numbers<[2], [0], [0, 1], [1], [0, 0, 0, 1, 1, 1], [], []>} : vector<8x8x8xf32>, vector<8x8xf32>, vector<8x8x8xf32> -> vector<8x8x8xf32>
    %39 = arith.addf %34, %38 : vector<8x8x8xf32>
    %c1_54 = arith.constant 1 : index
    %c1_55 = arith.constant 1 : index
    %c0_56 = arith.constant 0 : index
    %40 = vector.load %arg7[%c1_54, %c1_55, %c0_56] : memref<10x10x8xf32, #tpu.memory_space<vmem>>, vector<8x8x8xf32>
    %c1_57 = arith.constant 1 : index
    %c1_58 = arith.constant 1 : index
    %c0_59 = arith.constant 0 : index
    %c0_60 = arith.constant 0 : index
    %41 = vector.load %arg4[%c1_57, %c1_58, %c0_59, %c0_60] : memref<3x3x8x8xf32, #tpu.memory_space<vmem>>, vector<1x1x8x8xf32>
    %42 = vector.shape_cast %41 : vector<1x1x8x8xf32> to vector<8x8xf32>
    %cst_61 = arith.constant dense<0.000000e+00> : vector<8x8x8xf32>
    %43 = tpu.matmul %40, %42, %cst_61 {dimension_numbers = #tpu.dot_dimension_numbers<[2], [0], [0, 1], [1], [0, 0, 0, 1, 1, 1], [], []>} : vector<8x8x8xf32>, vector<8x8xf32>, vector<8x8x8xf32> -> vector<8x8x8xf32>
    %44 = arith.addf %39, %43 : vector<8x8x8xf32>
    %c1_62 = arith.constant 1 : index
    %c2_63 = arith.constant 2 : index
    %c0_64 = arith.constant 0 : index
    %45 = vector.load %arg7[%c1_62, %c2_63, %c0_64] : memref<10x10x8xf32, #tpu.memory_space<vmem>>, vector<8x8x8xf32>
    %c1_65 = arith.constant 1 : index
    %c2_66 = arith.constant 2 : index
    %c0_67 = arith.constant 0 : index
    %c0_68 = arith.constant 0 : index
    %46 = vector.load %arg4[%c1_65, %c2_66, %c0_67, %c0_68] : memref<3x3x8x8xf32, #tpu.memory_space<vmem>>, vector<1x1x8x8xf32>
    %47 = vector.shape_cast %46 : vector<1x1x8x8xf32> to vector<8x8xf32>
    %cst_69 = arith.constant dense<0.000000e+00> : vector<8x8x8xf32>
    %48 = tpu.matmul %45, %47, %cst_69 {dimension_numbers = #tpu.dot_dimension_numbers<[2], [0], [0, 1], [1], [0, 0, 0, 1, 1, 1], [], []>} : vector<8x8x8xf32>, vector<8x8xf32>, vector<8x8x8xf32> -> vector<8x8x8xf32>
    %49 = arith.addf %44, %48 : vector<8x8x8xf32>
    %c2_70 = arith.constant 2 : index
    %c0_71 = arith.constant 0 : index
    %c0_72 = arith.constant 0 : index
    %50 = vector.load %arg7[%c2_70, %c0_71, %c0_72] : memref<10x10x8xf32, #tpu.memory_space<vmem>>, vector<8x8x8xf32>
    %c2_73 = arith.constant 2 : index
    %c0_74 = arith.constant 0 : index
    %c0_75 = arith.constant 0 : index
    %c0_76 = arith.constant 0 : index
    %51 = vector.load %arg4[%c2_73, %c0_74, %c0_75, %c0_76] : memref<3x3x8x8xf32, #tpu.memory_space<vmem>>, vector<1x1x8x8xf32>
    %52 = vector.shape_cast %51 : vector<1x1x8x8xf32> to vector<8x8xf32>
    %cst_77 = arith.constant dense<0.000000e+00> : vector<8x8x8xf32>
    %53 = tpu.matmul %50, %52, %cst_77 {dimension_numbers = #tpu.dot_dimension_numbers<[2], [0], [0, 1], [1], [0, 0, 0, 1, 1, 1], [], []>} : vector<8x8x8xf32>, vector<8x8xf32>, vector<8x8x8xf32> -> vector<8x8x8xf32>
    %54 = arith.addf %49, %53 : vector<8x8x8xf32>
    %c2_78 = arith.constant 2 : index
    %c1_79 = arith.constant 1 : index
    %c0_80 = arith.constant 0 : index
    %55 = vector.load %arg7[%c2_78, %c1_79, %c0_80] : memref<10x10x8xf32, #tpu.memory_space<vmem>>, vector<8x8x8xf32>
    %c2_81 = arith.constant 2 : index
    %c1_82 = arith.constant 1 : index
    %c0_83 = arith.constant 0 : index
    %c0_84 = arith.constant 0 : index
    %56 = vector.load %arg4[%c2_81, %c1_82, %c0_83, %c0_84] : memref<3x3x8x8xf32, #tpu.memory_space<vmem>>, vector<1x1x8x8xf32>
    %57 = vector.shape_cast %56 : vector<1x1x8x8xf32> to vector<8x8xf32>
    %cst_85 = arith.constant dense<0.000000e+00> : vector<8x8x8xf32>
    %58 = tpu.matmul %55, %57, %cst_85 {dimension_numbers = #tpu.dot_dimension_numbers<[2], [0], [0, 1], [1], [0, 0, 0, 1, 1, 1], [], []>} : vector<8x8x8xf32>, vector<8x8xf32>, vector<8x8x8xf32> -> vector<8x8x8xf32>
    %59 = arith.addf %54, %58 : vector<8x8x8xf32>
    %c2_86 = arith.constant 2 : index
    %c2_87 = arith.constant 2 : index
    %c0_88 = arith.constant 0 : index
    %60 = vector.load %arg7[%c2_86, %c2_87, %c0_88] : memref<10x10x8xf32, #tpu.memory_space<vmem>>, vector<8x8x8xf32>
    %c2_89 = arith.constant 2 : index
    %c2_90 = arith.constant 2 : index
    %c0_91 = arith.constant 0 : index
    %c0_92 = arith.constant 0 : index
    %61 = vector.load %arg4[%c2_89, %c2_90, %c0_91, %c0_92] : memref<3x3x8x8xf32, #tpu.memory_space<vmem>>, vector<1x1x8x8xf32>
    %62 = vector.shape_cast %61 : vector<1x1x8x8xf32> to vector<8x8xf32>
    %cst_93 = arith.constant dense<0.000000e+00> : vector<8x8x8xf32>
    %63 = tpu.matmul %60, %62, %cst_93 {dimension_numbers = #tpu.dot_dimension_numbers<[2], [0], [0, 1], [1], [0, 0, 0, 1, 1, 1], [], []>} : vector<8x8x8xf32>, vector<8x8xf32>, vector<8x8x8xf32> -> vector<8x8x8xf32>
    %64 = arith.addf %59, %63 : vector<8x8x8xf32>
    %c0_94 = arith.constant 0 : index
    %c0_95 = arith.constant 0 : index
    %c0_96 = arith.constant 0 : index
    %c0_97 = arith.constant 0 : index
    %65 = vector.load %arg5[%c0_94, %c0_95, %c0_96, %c0_97] : memref<1x8x8x8xf32, #tpu.memory_space<vmem>>, vector<1x8x8x8xf32>
    %66 = vector.shape_cast %65 : vector<1x8x8x8xf32> to vector<8x8x8xf32>
    %67 = vector.shape_cast %64 : vector<8x8x8xf32> to vector<1x8x8x8xf32>
    tpu.vector_store %arg5[%c0_94, %c0_95, %c0_96, %c0_97], %67 {strides = array<i32>} : memref<1x8x8x8xf32, #tpu.memory_space<vmem>>, vector<1x8x8x8xf32>,
    %cst_98 = arith.constant dense<0.000000e+00> : vector<8x8xf32>
    %68 = vector.multi_reduction <add>, %64, %cst_98 [0] : vector<8x8x8xf32> to vector<8x8xf32>
    %cst_99 = arith.constant dense<0.000000e+00> : vector<8xf32>
    %69 = vector.multi_reduction <add>, %68, %cst_99 [0] : vector<8x8xf32> to vector<8xf32>
    %70 = vector.shape_cast %69 : vector<8xf32> to vector<1x8xf32>
    %71 = arith.mulf %64, %64 : vector<8x8x8xf32>
    %cst_100 = arith.constant dense<0.000000e+00> : vector<8x8xf32>
    %72 = vector.multi_reduction <add>, %71, %cst_100 [0] : vector<8x8x8xf32> to vector<8x8xf32>
    %cst_101 = arith.constant dense<0.000000e+00> : vector<8xf32>
    %73 = vector.multi_reduction <add>, %72, %cst_101 [0] : vector<8x8xf32> to vector<8xf32>
    %74 = vector.shape_cast %73 : vector<8xf32> to vector<1x8xf32>
    %c0_102 = arith.constant 0 : index
    %c0_103 = arith.constant 0 : index
    %c0_104 = arith.constant 0 : index
    %75 = vector.load %arg6[%c0_102, %c0_103, %c0_104] : memref<1x2x8xf32, #tpu.memory_space<vmem>>, vector<1x1x8xf32>
    %76 = vector.shape_cast %75 : vector<1x1x8xf32> to vector<1x8xf32>
    %77 = vector.shape_cast %70 : vector<1x8xf32> to vector<1x1x8xf32>
    tpu.vector_store %arg6[%c0_102, %c0_103, %c0_104], %77 {strides = array<i32>} : memref<1x2x8xf32, #tpu.memory_space<vmem>>, vector<1x1x8xf32>,
    %c0_105 = arith.constant 0 : index
    %c1_106 = arith.constant 1 : index
    %c0_107 = arith.constant 0 : index
    %78 = vector.load %arg6[%c0_105, %c1_106, %c0_107] : memref<1x2x8xf32, #tpu.memory_space<vmem>>, vector<1x1x8xf32>
    %79 = vector.shape_cast %78 : vector<1x1x8xf32> to vector<1x8xf32>
    %80 = vector.shape_cast %74 : vector<1x8xf32> to vector<1x1x8xf32>
    tpu.vector_store %arg6[%c0_105, %c1_106, %c0_107], %80 {strides = array<i32>} : memref<1x2x8xf32, #tpu.memory_space<vmem>>, vector<1x1x8xf32>,
    return
  }
  func.func @transform_0(%arg0: i32) -> (i32, i32, i32, i32) {
    %c0_i32 = arith.constant 0 : i32
    %c0_i32_0 = arith.constant 0 : i32
    %c0_i32_1 = arith.constant 0 : i32
    %c0_i32_2 = arith.constant 0 : i32
    return %arg0, %c0_i32, %c0_i32_0, %c0_i32_1 : i32, i32, i32, i32
  }
  func.func @transform_1(%arg0: i32) -> (i32, i32) {
    %c0_i32 = arith.constant 0 : i32
    %c0_i32_0 = arith.constant 0 : i32
    %c0_i32_1 = arith.constant 0 : i32
    return %c0_i32, %c0_i32_0 : i32, i32
  }
  func.func @transform_2(%arg0: i32) -> (i32, i32) {
    %c0_i32 = arith.constant 0 : i32
    %c0_i32_0 = arith.constant 0 : i32
    %c0_i32_1 = arith.constant 0 : i32
    return %c0_i32, %c0_i32_0 : i32, i32
  }
  func.func @transform_3(%arg0: i32) -> (i32, i32, i32, i32) {
    %c0_i32 = arith.constant 0 : i32
    %c0_i32_0 = arith.constant 0 : i32
    %c0_i32_1 = arith.constant 0 : i32
    %c0_i32_2 = arith.constant 0 : i32
    %c0_i32_3 = arith.constant 0 : i32
    return %c0_i32, %c0_i32_0, %c0_i32_1, %c0_i32_2 : i32, i32, i32, i32
  }
  func.func @transform_4(%arg0: i32) -> (i32, i32, i32, i32) {
    %c0_i32 = arith.constant 0 : i32
    %c0_i32_0 = arith.constant 0 : i32
    %c0_i32_1 = arith.constant 0 : i32
    %c0_i32_2 = arith.constant 0 : i32
    return %arg0, %c0_i32, %c0_i32_0, %c0_i32_1 : i32, i32, i32, i32
  }
  func.func @transform_5(%arg0: i32) -> (i32, i32, i32) {
    %c0_i32 = arith.constant 0 : i32
    %c0_i32_0 = arith.constant 0 : i32
    %c0_i32_1 = arith.constant 0 : i32
    return %arg0, %c0_i32, %c0_i32_0 : i32, i32, i32
  }
}

</mosaic_0001>

<bundles_post_ra>
// kernel: _lambda_.3
= control target key start
LH: loop header
LB: loop body
LE: loop exit
PB: predicated region body
PF: predicated region fallthrough
CT: control target
= control target key end

     0   :  { %11 = vsyncpa [#allocation4], 0  ;;  %s3145_s0 = inlined_call_operand.hbm [shape: f32[2,8,8,8], index: 0, kind: input, shape index: {}]   ;;  %s3146_s1 = inlined_call_operand.hbm [shape: f32[1,8], index: 1, kind: input, shape index: {}]   ;;  %s3147_s2 = inlined_call_operand.hbm [shape: f32[1,8], index: 2, kind: input, shape index: {}]   ;;  %s3148_s3 = inlined_call_operand.hbm [shape: f32[3,3,8,8], index: 3, kind: input, shape index: {}]   ;;  %s3149_s4 = inlined_call_operand.hbm [shape: f32[2,8,8,8], index: 4, kind: output, shape index: {0}]   ;;  %s3150_s5 = inlined_call_operand.hbm [shape: f32[2,2,8], index: 5, kind: output, shape index: {1}]  }
   0x1   :  { %13 = vsyncpa [#allocation4 + $0x1], 0 }
   0x2   :  { %14 = vsyncpa [#allocation7], 0 }
   0x3   :  { %15 = vsyncpa [#allocation10], 0 }
   0x4   :  { %16 = vsyncpa [#allocation5], 0 }
   0x5   :  { %18 = vsyncpa [#allocation5 + $0x1], 0 }
   0x6   :  { %19 = vsyncpa [#allocation13], 0 }
   0x7   :  { %21 = vsyncpa [#allocation13 + $0x1], 0  ;;  %s2630_s18 = smov 0   ;;  %s2632_s19 = smov 0  }
   0x8   :  { %s2634_s20 = smov 0   ;;  %s2636_s21 = smov 0  }
   0x9 LB: > { %s2651_s22 = sadd.s32 4294967295, %s2587_s21   ;;  %s1908_s23 = sadd.s32 4294967294, %s2587_s21   ;;  %s2587_s21 = sphi %s2636_s21, %s3173_s21   ;;  %s2583_s20 = sphi %s2634_s20, %s3172_s20   ;;  %s2579_s19 = sphi %s2632_s19, %s3171_s19   ;;  %s2575_s18 = sphi %s2630_s18, %s3170_s18  }
   0xa   : > { %p47_p0 = scmp.ne.s32.totalorder %s2579_s19, %s2575_s18  ;;  %p3151_p1 = scmp.eq.s32.totalorder %s2651_s22, 0 }
   0xb   : > { %p140_p3 = scmp.eq.s32.totalorder %s1908_s23, 1  ;;  %p1909_p5 = scmp.ge.s32.totalorder %s2587_s21, 1 }
   0xc   : > { %p2660_p4 = por %p3151_p1, %p47_p0  ;;  %p173_p7 = scmp.lt.s32.totalorder %s2587_s21, 3 }
   0xd   : > { %p2665_p6 = por %p140_p3, %p47_p0  ;;  %s2589_s27 = smov [#allocation6]  }
   0xe   : > { %s3154_s24 = scalar_select %p2660_p4, 1, 0 }
   0xf   : > { %s3155_s25 = scalar_select %p2665_p6, 1, 0 }
  0x10   : > { %p2670_p8 = pnand %p1909_p5, %p173_p7  ;;  %s186_s28 = sshll.u32 %s2589_s27, 4  ;;  %s187_s28 = int_to_ptr.vmem [resolvable:$true] %s186_s28 }
  0x11   : > { %s2590_s29 = smov [#allocation8]   ;;  %s2591_s7 = smov [#allocation9]  }
  0x12   : > { %s3156_s26 = scalar_select %p2670_p8, 1, 0 }
  0x13   : > { %p2298_p10 = pneg %p2670_p8  ;;  %s197_s30 = sshll.u32 %s2590_s29, 4  ;;  %s2683_s30 = int_to_ptr.vmem [resolvable:$true] %s197_s30 }
  0x14   : > { %s207_s8 = sshll.u32 %s2591_s7, 4  ;;  %s2367_s11 = scalar_lea.hbm %s3146_s1, 16  ;;  %s2685_s8 = int_to_ptr.vmem [resolvable:$true] %s207_s8 }
  0x15   : > { %p2679_p11 = pnand %p2298_p10, %p3151_p1  ;;  %p2368_p12 = scmp.ne.s32.totalorder %s3146_s1, %s2367_s11 }
  0x16   : > { %p2374_p5 = scmp.lt.u32.totalorder %s2367_s11, %s3146_s1 }
  0x17   : > { %p2695_p13 = pneg %p2679_p11 }
  0x19   : > { %p2370_p0 = pnand %p2695_p13, %p2368_p12 }
  0x1b   : > { %p2371_p3 = pneg %p2370_p0 }
  0x1d   : > { %p2376_p7 = pnand %p2374_p5, %p2371_p3 }
  0x1f   : > { %2379 = shalt.err (!%p2376_p7)
}
  0x20   : > { %s2380_s17 = scalar_lea.vmem %s187_s28, 16  ;;  %s2387_s23 = scalar_lea.vmem %s187_s28, 32 }
  0x21   : > { %p2381_p10 = scmp.ne.s32.totalorder %s187_s28, %s2380_s17  ;;  %p2388_p2 = scmp.lt.s32.totalorder %s187_s28, %s187_s28 }
  0x22   : > { %p2389_p6 = scmp.lt.s32.totalorder %s2387_s23, %s2380_s17 }
  0x23   : > { %p2383_p9 = pnand %p2381_p10, %p2695_p13 }
  0x24   : > { %p2390_p4 = por %p2389_p6, %p2388_p2 }
  0x25   : > { %p2384_p1 = pneg %p2383_p9 }
  0x27   : > { %p2391_p8 = pnand %p2390_p4, %p2384_p1 }
  0x29   : > { %2394 = shalt.err (!%p2391_p8)
}
  0x2a   : > { %2301 = dma.hbm_to_vmem [thread:$0]  (!%p2679_p11), %s3146_s1, 16, %s187_s28, [#allocation7]  }
  0x2b   : > { %s2395_s10 = scalar_lea.hbm %s3147_s2, 16 }
  0x2c   : > { %p2396_p9 = scmp.ne.s32.totalorder %s3147_s2, %s2395_s10  ;;  %p2402_p1 = scmp.lt.u32.totalorder %s2395_s10, %s3147_s2 }
  0x2e   : > { %p2398_p12 = pnand %p2396_p9, %p2695_p13 }
  0x30   : > { %p2399_p2 = pneg %p2398_p12 }
  0x32   : > { %p2404_p4 = pnand %p2402_p1, %p2399_p2 }
  0x34   : > { %2407 = shalt.err (!%p2404_p4)
}
  0x35   : > { %s2408_s28 = scalar_lea.vmem %s2683_s30, 16  ;;  %s2415_s16 = scalar_lea.vmem %s2683_s30, 32 }
  0x36   : > { %p2409_p6 = scmp.ne.s32.totalorder %s2683_s30, %s2408_s28  ;;  %p2416_p3 = scmp.lt.s32.totalorder %s2683_s30, %s2683_s30 }
  0x37   : > { %p2417_p5 = scmp.lt.s32.totalorder %s2415_s16, %s2408_s28 }
  0x38   : > { %p2411_p8 = pnand %p2409_p6, %p2695_p13 }
  0x39   : > { %p2418_p7 = por %p2417_p5, %p2416_p3 }
  0x3a   : > { %p2412_p0 = pneg %p2411_p8 }
  0x3c   : > { %p2419_p10 = pnand %p2418_p7, %p2412_p0 }
  0x3e   : > { %2422 = shalt.err (!%p2419_p10)
}
  0x3f   : > { %2304 = dma.hbm_to_vmem [thread:$0]  (!%p2679_p11), %s3147_s2, 16, %s2683_s30, [#allocation7]  }
  0x40   : > { %s2423_s7 = scalar_lea.hbm %s3148_s3, 1152 }
  0x41   : > { %p2424_p9 = scmp.ne.s32.totalorder %s3148_s3, %s2423_s7  ;;  %p2430_p1 = scmp.lt.u32.totalorder %s2423_s7, %s3148_s3 }
  0x43   : > { %p2426_p12 = pnand %p2424_p9, %p2695_p13 }
  0x45   : > { %p2427_p2 = pneg %p2426_p12 }
  0x47   : > { %p2432_p4 = pnand %p2430_p1, %p2427_p2 }
  0x49   : > { %2435 = shalt.err (!%p2432_p4)
}
  0x4a   : > { %s2436_s30 = scalar_lea.vmem %s2685_s8, 1152  ;;  %p2444_p3 = scmp.lt.s32.totalorder %s2685_s8, %s2685_s8 }
  0x4b   : > { %p2437_p6 = scmp.ne.s32.totalorder %s2685_s8, %s2436_s30  ;;  %p2445_p5 = scmp.lt.s32.totalorder %s2436_s30, %s2436_s30 }
  0x4d   : > { %p2439_p8 = pnand %p2437_p6, %p2695_p13  ;;  %p2446_p7 = por %p2445_p5, %p2444_p3 }
  0x4f   : > { %p2440_p0 = pneg %p2439_p8 }
  0x51   : > { %p2447_p10 = pnand %p2446_p7, %p2440_p0 }
  0x53   : > { %2450 = shalt.err (!%p2447_p10)
}
  0x54   : > { %s2592_s13 = smov 128   ;;  %s2593_s14 = smov 8  }
  0x55   : > { %2307 = dma.hbm_to_vmem [thread:$0]  (!%p2679_p11), %s3148_s3, 1152, %s2685_s8, [#allocation10], %s2592_s13, %s2592_s13, %s2593_s14  }
  0x56   : > { %s2762_s16 = sadd.s32 1, %s2587_s21   ;;  %s34_s23 = sadd.s32 1, %s2583_s20 }
  0x57   : > { %s31_s17 = ssub.s32 %s2587_s21, %s2762_s16  ;;  %p41_p9 = scmp.ne.s32.totalorder %s2583_s20, %s2579_s19 }
  0x58   : > { %p32_p13 = scmp.eq.s32.totalorder %s31_s17, 0  ;;  %p42_p12 = scmp.eq.s32.totalorder %s2587_s21, 0 }
  0x59   : > { %p2322_p2 = scmp.lt.s32.totalorder %s2587_s21, 2  ;;  %p3159_p4 = scmp.eq.s32.totalorder %s2651_s22, 1 }
  0x5a   : > { %s2772_s27 = scalar_select %p32_p13, %s2583_s20, %s34_s23  }
  0x5b   : > { %p43_p1 = por %p42_p12, %p41_p9  ;;  %p2776_p6 = por %p3159_p4, %p41_p9 }
  0x5c   : > { %s221_s29 = sand.u32 1, %s2583_s20   ;;  %s2005_s7 = sshll.u32 %s2587_s21, 10 }
  0x5d   : > { %s1914_s8 = sshll.u32 %s221_s29, 6  ;;  %s2785_s11 = scalar_lea.hbm %s3145_s0, %s2005_s7 }
  0x5e   : > { %s225_s12 = scalar_lea.vmem [#allocation3], %s1914_s8  ;;  %p2787_p11 = pnand %p2322_p2, %p43_p1 }
  0x5f   : > { %s232_s30 = sshll.u32 %s225_s12, 4  ;;  %s2793_s28 = scalar_lea.sflag [#allocation4], %s221_s29  ;;  %s2791_s30 = int_to_ptr.vmem [resolvable:$true] %s232_s30 }
  0x60   : > { %s2451_s17 = scalar_lea.hbm %s2785_s11, 1024  ;;  %p2453_p0 = pneg %p2787_p11 }
  0x61   : > { %p2452_p8 = scmp.ne.s32.totalorder %s2785_s11, %s2451_s17  ;;  %s2456_s8 = scalar_lea.hbm %s3145_s0, 2048 }
  0x62   : > { %p2457_p7 = scmp.lt.u32.totalorder %s2785_s11, %s3145_s0  ;;  %p2458_p10 = scmp.lt.u32.totalorder %s2456_s8, %s2451_s17 }
  0x63   : > { %p2454_p3 = pnand %p2453_p0, %p2452_p8  ;;  %p2460_p9 = scmp.lt.u32.totalorder %s2451_s17, %s2785_s11 }
  0x64   : > { %p2459_p13 = por %p2458_p10, %p2457_p7 }
  0x65   : > { %p2455_p5 = pneg %p2454_p3 }
  0x66   : > { %p2461_p12 = por %p2460_p9, %p2459_p13 }
  0x68   : > { %p2462_p2 = pnand %p2461_p12, %p2455_p5 }
  0x6a   : > { %2465 = shalt.err (!%p2462_p2)
}
  0x6b   : > { %s2466_s29 = scalar_lea.vmem %s2791_s30, 1024  ;;  %s2594_s12 = smov [#allocation3]  }
  0x6c   : > { %p2467_p1 = scmp.ne.s32.totalorder %s2791_s30, %s2466_s29  ;;  %s2471_s23 = sshll.u32 %s2594_s12, 4  ;;  %s2472_s23 = int_to_ptr.vmem [resolvable:$false] %s2471_s23 }
  0x6d   : > { %s2473_s7 = scalar_lea.vmem %s2472_s23, 2048  ;;  %p2474_p3 = scmp.lt.s32.totalorder %s2791_s30, %s2472_s23 }
  0x6e   : > { %p2469_p4 = pnand %p2467_p1, %p2453_p0  ;;  %p2475_p7 = scmp.lt.s32.totalorder %s2473_s7, %s2466_s29 }
  0x70   : > { %p2470_p8 = pneg %p2469_p4  ;;  %p2476_p10 = por %p2475_p7, %p2474_p3 }
  0x72   : > { %p2477_p13 = pnand %p2476_p10, %p2470_p8 }
  0x74   : > { %2480 = shalt.err (!%p2477_p13)
}
  0x75   : > { %2311 = dma.hbm_to_vmem [thread:$0]  (!%p2787_p11), %s2785_s11, 1024, %s2791_s30, %s2793_s28, %s2592_s13, %s2592_s13, %s2593_s14  }
  0x76   : > { %p3162_p0 = scmp.ne.s32.totalorder %s3156_s26, 0 }
  0x77   : > { %s2827_s17 = sand.u32 (!%p3162_p0), 1, %s2579_s19   ;;  %p3163_p5 = scmp.ne.s32.totalorder (!%p3162_p0), %s3154_s24, 0 }
  0x78   : > { %244 = sbr.rel (%p3162_p0) target bundleno = 485 (0x1e5), region = 36  ;;  %s1918_s8 = sshll.u32 (!%p3162_p0), %s2827_s17, 6 }
  0x79   : > { %s247_s9 = scalar_lea.sflag (!%p3162_p0), [#allocation4], %s2827_s17  ;;  %s2833_s15 = scalar_lea.vmem (!%p3162_p0), [#allocation3], %s1918_s8 }
  0x7f   : > { %2554 = dma.done.wait (%p3163_p5), %s247_s9, 1024  }
  0x80   : > { %2556 = vsyncadd (%p3163_p5), %s247_s9, 4294966272  ;;  %p3164_p11 = scmp.eq.s32.totalorder %s2651_s22, 0 }
  0x82   : > { %2558 = dma.done.wait (%p3164_p11), [#allocation7], 32   ;;  %p3165_p9 = pmov %p3164_p11 }
  0x84   : > { %2560 = vsyncadd (%p3165_p9), [#allocation7], 4294967264  ;;  %p3166_p12 = pmov %p3165_p9 }
  0x85   : > { %p3167_p2 = pmov %p3165_p9 }
  0x86   : > { %2562 = dma.done.wait (%p3166_p12), [#allocation10], 1152  }
  0x87   : > { %2564 = vsyncadd (%p3167_p2), [#allocation10], 4294966144  ;;  %vm340_vm0 = vcmask 64512   ;;  %vm342_vm1 = vcmask 58368   ;;  %vm348_vm2 = vcmask 57344   ;;  %v2595_v0 = vmov 0.0  }
  0x88   : > { %341 = vst.msk [vmem:[#allocation2] sm:$0xff] %vm340_vm0, %v2595_v0  ;;  %345 = vst.msk [vmem:[#allocation2 + $0x90] sm:$0xff] %vm340_vm0, %v2595_v0  ;;  %v391_v1 = vld [vmem:[#allocation9 + $0x8] sm:$0xff]  ;;  %v2865_v2 = vld [vmem:[#allocation9 + $0x20] sm:$0xff]  ;;  %s3025_s24 = scalar_lea.vmem [#allocation11], %s1918_s8  ;;  %s2006_s26 = sshll.u32 %s2651_s22, 10 }
  0x89   : > { %343 = vst.msk [vmem:[#allocation2 + $0x8] sm:$0x3] %vm342_vm1, %v2595_v0  ;;  %346 = vst.msk [vmem:[#allocation2 + $0x98] sm:$0x3] %vm342_vm1, %v2595_v0  ;;  %v294_v3 = vld [vmem:[%s2833_s15] sm:$0xff]  ;;  %2088 = vmatprep.subr.mxu1 %v391_v1  ;;  %2144 = vmatprep.subr.mxu0 %v2865_v2  ;;  %v1100_v9 = vld [vmem:[#allocation9 + $0x28] sm:$0xff]  ;;  %s3053_s30 = scalar_lea.hbm %s3149_s4, %s2006_s26 }
  0x8a   : > { %357 = vst.msk [vmem:[#allocation2 + $0x19] sm:$0x1] %vm348_vm2, %v2595_v0  ;;  %349 = vst.msk [vmem:[#allocation2 + $0x10] sm:$0x1] %vm348_vm2, %v2595_v0  ;;  %v1924_v5 = vld [vmem:[#allocation6] ss:$0 sm:$0xff]  ;;  %2089 = vmatpush3.msra.mxu1 %v391_v1  ;;  %2145 = vmatpush3.msra.mxu0 %v2865_v2 }
  0x8b   : > { %350 = vst.msk [vmem:[#allocation2 + $0x20] sm:$0x1] %vm348_vm2, %v2595_v0  ;;  %351 = vst.msk [vmem:[#allocation2 + $0x30] sm:$0x1] %vm348_vm2, %v2595_v0  ;;  %v1925_v6 = vld [vmem:[#allocation8] ss:$0 sm:$0xff]  ;;  %v309_v7 = vmul.f32 %v1924_v5, %v294_v3  ;;  %2158 = vmatprep.subr.mxu0 %v1100_v9 }
  0x8c   : > { %352 = vst.msk [vmem:[#allocation2 + $0x40] sm:$0x1] %vm348_vm2, %v2595_v0  ;;  %353 = vst.msk [vmem:[#allocation2 + $0x50] sm:$0x1] %vm348_vm2, %v2595_v0  ;;  %v381_v8 = vld [vmem:[#allocation9] sm:$0xff]  ;;  %v296_v12 = vld [vmem:[%s2833_s15 + $0x10] sm:$0xff] }
  0x8d   : > { %354 = vst.msk [vmem:[#allocation2 + $0x60] sm:$0x1] %vm348_vm2, %v2595_v0  ;;  %355 = vst.msk [vmem:[#allocation2 + $0x70] sm:$0x1] %vm348_vm2, %v2595_v0  ;;  %v295_v10 = vld [vmem:[%s2833_s15 + $0x8] sm:$0xff]  ;;  %2102 = vmatprep.subr.mxu1 %v381_v8  ;;  %v297_v13 = vld [vmem:[%s2833_s15 + $0x18] sm:$0xff]  ;;  %v324_v15 = vadd.f32 %v1925_v6, %v309_v7  ;;  %v311_v16 = vmul.f32 %v1924_v5, %v296_v12 }
  0x8e   : > { %356 = vst.msk [vmem:[#allocation2 + $0x80] sm:$0x1] %vm348_vm2, %v2595_v0  ;;  %358 = vst.msk [vmem:[#allocation2 + $0x29] sm:$0x1] %vm348_vm2, %v2595_v0  ;;  %v310_v11 = vmul.f32 %v1924_v5, %v295_v10  ;;  %v298_v14 = vld [vmem:[%s2833_s15 + $0x20] sm:$0xff]  ;;  %v312_v17 = vmul.f32 %v1924_v5, %v297_v13  ;;  %v299_v19 = vld [vmem:[%s2833_s15 + $0x28] sm:$0xff] }
  0x8f   : > { %359 = vst.msk [vmem:[#allocation2 + $0x39] sm:$0x1] %vm348_vm2, %v2595_v0  ;;  %360 = vst.msk [vmem:[#allocation2 + $0x49] sm:$0x1] %vm348_vm2, %v2595_v0  ;;  %v313_v18 = vmul.f32 %v1924_v5, %v298_v14  ;;  %v300_v20 = vld [vmem:[%s2833_s15 + $0x30] sm:$0xff]  ;;  %v314_v22 = vmul.f32 %v1924_v5, %v299_v19  ;;  %v301_v24 = vld [vmem:[%s2833_s15 + $0x38] sm:$0xff]  ;;  %v326_v26 = vadd.f32 %v1925_v6, %v311_v16 }
  0x90   : > { %361 = vst.msk [vmem:[#allocation2 + $0x59] sm:$0x1] %vm348_vm2, %v2595_v0  ;;  %362 = vst.msk [vmem:[#allocation2 + $0x69] sm:$0x1] %vm348_vm2, %v2595_v0  ;;  %v382_v4 = vld [vmem:[#allocation2 + $0x1] sm:$0xff]  ;;  %v325_v21 = vadd.f32 %v1925_v6, %v310_v11  ;;  %v315_v23 = vmul.f32 %v1924_v5, %v300_v20  ;;  %v332_v25 = vmax.f32 %v324_v15, 0.0  ;;  %v327_v27 = vadd.f32 %v1925_v6, %v312_v17 }
  0x91   : > { %363 = vst.msk [vmem:[#allocation2 + $0x79] sm:$0x1] %vm348_vm2, %v2595_v0  ;;  %364 = vst.msk [vmem:[#allocation2 + $0x89] sm:$0x1] %vm348_vm2, %v2595_v0  ;;  %2090 = vmatprep.mubr.msk.f32.mxu1 %vm340_vm0, %v382_v4  ;;  %v328_v28 = vadd.f32 %v1925_v6, %v313_v18  ;;  %v329_v30 = vadd.f32 %v1925_v6, %v314_v22  ;;  %v316_v32 = vmul.f32 %v1924_v5, %v301_v24  ;;  %v1248_v42 = vld [vmem:[#allocation9 + $0x30] sm:$0xff]  ;;  %v1395_v51 = vld [vmem:[#allocation9 + $0x38] sm:$0xff] }
  0x92   : > { %v333_v29 = vmax.f32 %v325_v21, 0.0  ;;  %v330_v31 = vadd.f32 %v1925_v6, %v315_v23  ;;  %365 = vst.msk [vmem:[#allocation2 + $0x11] sm:$0xff] %vm340_vm0, %v332_v25  ;;  %v334_v33 = vmax.f32 %v326_v26, 0.0  ;;  %v335_v34 = vmax.f32 %v327_v27, 0.0  ;;  %v659_v44 = vld [vmem:[#allocation9 + $0x10] sm:$0xff]  ;;  %v373_v54 = vld [vmem:[#allocation2] sm:$0xff] }
  0x93   : > { %v336_v35 = vmax.f32 %v328_v28, 0.0  ;;  %v337_v36 = vmax.f32 %v329_v30, 0.0  ;;  %v331_v38 = vadd.f32 %v1925_v6, %v316_v32  ;;  %v806_v60 = vld [vmem:[#allocation9 + $0x18] sm:$0xff]  ;;  %v1542_v3 = vld [vmem:[#allocation9 + $0x40] sm:$0xff]  ;;  %v1246_v7 = vld [vmem:[#allocation2 + $0x90] sm:$0xff]  ;;  %s1761_s13 = sshll.u32 %s3025_s24, 4  ;;  %s3055_s13 = int_to_ptr.vmem [resolvable:$true] %s1761_s13 }
  0x94   : > { %366 = vst.msk [vmem:[#allocation2 + $0x21] sm:$0xff] %vm340_vm0, %v333_v29  ;;  %v338_v37 = vmax.f32 %v330_v31, 0.0  ;;  %367 = vst.msk [vmem:[#allocation2 + $0x31] sm:$0xff] %vm340_vm0, %v334_v33  ;;  %v650_v5 = vld [vmem:[#allocation2 + $0x2] sm:$0xff]  ;;  %s1743_s28 = scalar_lea.sflag [#allocation5], %s2827_s17  ;;  %s2481_s10 = scalar_lea.vmem %s3055_s13, 1024 }
  0x95   : > { %368 = vst.msk [vmem:[#allocation2 + $0x41] sm:$0xff] %vm340_vm0, %v335_v34  ;;  %369 = vst.msk [vmem:[#allocation2 + $0x51] sm:$0xff] %vm340_vm0, %v336_v35  ;;  %v339_v39 = vmax.f32 %v331_v38, 0.0  ;;  %p2482_p1 = scmp.ne.s32.totalorder %s3055_s13, %s2481_s10  ;;  %s2596_s29 = smov [#allocation11]  }
  0x96   : > { %370 = vst.msk [vmem:[#allocation2 + $0x61] sm:$0xff] %vm340_vm0, %v337_v36  ;;  %371 = vst.msk [vmem:[#allocation2 + $0x71] sm:$0xff] %vm340_vm0, %v338_v37  ;;  %s2485_s12 = sshll.u32 %s2596_s29, 4  ;;  %s2486_s12 = int_to_ptr.vmem [resolvable:$false] %s2485_s12 }
  0x97   : > { %372 = vst.msk [vmem:[#allocation2 + $0x81] sm:$0xff] %vm340_vm0, %v339_v39  ;;  %p2483_p4 = pnand %p2482_p1, %p2776_p6  ;;  %s2487_s23 = scalar_lea.vmem %s2486_s12, 2048 }
  0x98   : > { %p2488_p3 = scmp.lt.s32.totalorder %s3055_s13, %s2486_s12  ;;  %p2489_p7 = scmp.lt.s32.totalorder %s2487_s23, %s2481_s10 }
  0x99   : > { %v383_v40 = vld [vmem:[#allocation2 + $0x11] sm:$0xff]  ;;  %p2484_p8 = pneg %p2483_p4 }
  0x9a   : > { %2091 = vmatmul.mubr.msk.f32.vlgmr.msra.gmra.mrb[0].mxu1 %vm340_vm0, %v383_v40  ;;  %2146 = vmatprep.mubr.msk.f32.mxu0 %vm340_vm0, %v383_v40  ;;  %v1091_v46 = vld [vmem:[#allocation2 + $0x12] sm:$0xff]  ;;  %p2490_p10 = por %p2489_p7, %p2488_p3 }
  0x9b   : > { %v2888_v41 = vld [vmem:[#allocation2 + $0x21] sm:$0xff]  ;;  %2103 = vmatpush3.msra.mxu1 %v381_v8  ;;  %v2892_v43 = vld [vmem:[#allocation2 + $0x31] sm:$0xff] }
  0x9c   : > { %2147 = vmatmul.mubr.msk.f32.vlgmr.msra.gmra.mrb[0].mxu0 %vm340_vm0, %v2888_v41  ;;  %2093 = vmatprep.mubr.msk.f32.mxu1 %vm340_vm0, %v2888_v41  ;;  %v2896_v45 = vld [vmem:[#allocation2 + $0x41] sm:$0xff]  ;;  %v2906_v47 = vld [vmem:[#allocation2 + $0x51] sm:$0xff]  ;;  %p2491_p13 = pnand %p2490_p10, %p2484_p8 }
  0x9d   : > { %2159 = vmatpush3.msra.mxu0 %v1100_v9  ;;  %2149 = vmatprep.mubr.msk.f32.mxu0 %vm340_vm0, %v2892_v43  ;;  %v2909_v48 = vld [vmem:[#allocation2 + $0x22] sm:$0xff]  ;;  %v2913_v50 = vld [vmem:[#allocation2 + $0x32] sm:$0xff] }
  0x9e   : > { %2172 = vmatprep.subr.mxu0 %v1248_v42  ;;  %2094 = vmatmul.mubr.msk.f32.gmra.mrb[2].mxu1 %vm340_vm0, %v2892_v43  ;;  %v2911_v49 = vld [vmem:[#allocation2 + $0x61] sm:$0xff]  ;;  %v2921_v52 = vld [vmem:[#allocation2 + $0x71] sm:$0xff] }
  0x9f   : > { %2116 = vmatprep.subr.mxu1 %v659_v44  ;;  %2096 = vmatprep.mubr.msk.f32.mxu1 %vm340_vm0, %v2896_v45  ;;  %v2925_v53 = vld [vmem:[#allocation2 + $0x42] sm:$0xff]  ;;  %v2927_v55 = vld [vmem:[#allocation2 + $0x52] sm:$0xff] }
  0xa0   : > { %2150 = vmatmul.mubr.msk.f32.gmra.mrb[2].mxu0 %vm340_vm0, %v2896_v45  ;;  %v374_v56 = vld [vmem:[#allocation2 + $0x10] sm:$0xff]  ;;  %v2936_v57 = vld [vmem:[#allocation2 + $0x62] sm:$0xff] }
  0xa1   : > { %2160 = vmatprep.mubr.msk.f32.mxu0 %vm340_vm0, %v1091_v46  ;;  %v375_v58 = vld [vmem:[#allocation2 + $0x20] sm:$0xff]  ;;  %v2938_v59 = vld [vmem:[#allocation2 + $0x72] sm:$0xff] }
  0xa2   : > { %2097 = vmatmul.mubr.msk.f32.gmra.mrb[4].mxu1 %vm340_vm0, %v2906_v47  ;;  %v376_v61 = vld [vmem:[#allocation2 + $0x30] sm:$0xff]  ;;  %v2946_v62 = vld [vmem:[#allocation2 + $0x82] sm:$0xff] }
  0xa3   : > { %2099 = vmatprep.mubr.msk.f32.mxu1 %vm340_vm0, %v2911_v49  ;;  %v377_v63 = vld [vmem:[#allocation2 + $0x40] sm:$0xff]  ;;  %v378_v0 = vld [vmem:[#allocation2 + $0x50] sm:$0xff] }
  0xa4   : > { %2161 = vmatmul.mubr.msk.f32.vlgmr.msra.gmra.mrb[0].mxu0 %vm340_vm0, %v2909_v48  ;;  %v379_v1 = vld [vmem:[#allocation2 + $0x60] sm:$0xff]  ;;  %v380_v4 = vld [vmem:[#allocation2 + $0x70] sm:$0xff] }
  0xa5   : > { %2173 = vmatpush3.msra.mxu0 %v1248_v42  ;;  %2163 = vmatprep.mubr.msk.f32.mxu0 %vm340_vm0, %v2913_v50  ;;  %v1245_v6 = vld [vmem:[#allocation2 + $0x80] sm:$0xff]  ;;  %v1393_v9 = vld [vmem:[#allocation2 + $0x91] sm:$0xff] }
  0xa6   : > { %2186 = vmatprep.subr.mxu0 %v1395_v51  ;;  %2100 = vmatmul.mubr.msk.f32.gmra.mrb[6].mxu1 %vm340_vm0, %v2921_v52  ;;  %v1392_v8 = vld [vmem:[#allocation2 + $0x81] sm:$0xff] }
  0xa7   : > { %2104 = vmatprep.mubr.msk.f32.mxu1 %vm340_vm0, %v373_v54 }
  0xa8   : > { %2164 = vmatmul.mubr.msk.f32.gmra.mrb[2].mxu0 %vm340_vm0, %v2925_v53 }
  0xa9   : > { %2166 = vmatprep.mubr.msk.f32.mxu0 %vm340_vm0, %v2927_v55 }
  0xaa   : > { %2105 = vmatmul.mubr.msk.f32.vlgmr.msra.gmra.mrb[0].mxu1 %vm340_vm0, %v374_v56 }
  0xab   : > { %2117 = vmatpush3.msra.mxu1 %v659_v44  ;;  %2107 = vmatprep.mubr.msk.f32.mxu1 %vm340_vm0, %v375_v58 }
  0xac   : > { %2167 = vmatmul.mubr.msk.f32.gmra.mrb[4].mxu0 %vm340_vm0, %v2936_v57  ;;  %2130 = vmatprep.subr.mxu1 %v806_v60 }
  0xad   : > { %2169 = vmatprep.mubr.msk.f32.mxu0 %vm340_vm0, %v2938_v59 }
  0xae   : > { %2108 = vmatmul.mubr.msk.f32.gmra.mrb[2].mxu1 %vm340_vm0, %v376_v61 }
  0xaf   : > { %2110 = vmatprep.mubr.msk.f32.mxu1 %vm340_vm0, %v377_v63 }
  0xb0   : > { %2170 = vmatmul.mubr.msk.f32.gmra.mrb[6].mxu0 %vm340_vm0, %v2946_v62 }
  0xb1   : > { %2174 = vmatprep.mubr.msk.f32.mxu0 %vm340_vm0, %v375_v58 }
  0xb2   : > { %2111 = vmatmul.mubr.msk.f32.gmra.mrb[4].mxu1 %vm340_vm0, %v378_v0 }
  0xb3   : > { %2113 = vmatprep.mubr.msk.f32.mxu1 %vm340_vm0, %v379_v1 }
  0xb4   : > { %2175 = vmatmul.mubr.msk.f32.vlgmr.msra.gmra.mrb[0].mxu0 %vm340_vm0, %v376_v61 }
  0xb5   : > { %2187 = vmatpush3.msra.mxu0 %v1395_v51  ;;  %2177 = vmatprep.mubr.msk.f32.mxu0 %vm340_vm0, %v377_v63 }
  0xb6   : > { %2200 = vmatprep.subr.mxu0 %v1542_v3  ;;  %2114 = vmatmul.mubr.msk.f32.gmra.mrb[6].mxu1 %vm340_vm0, %v380_v4 }
  0xb7   : > { %2118 = vmatprep.mubr.msk.f32.mxu1 %vm340_vm0, %v650_v5 }
  0xb8   : > { %2178 = vmatmul.mubr.msk.f32.gmra.mrb[2].mxu0 %vm340_vm0, %v378_v0 }
  0xb9   : > { %2180 = vmatprep.mubr.msk.f32.mxu0 %vm340_vm0, %v379_v1 }
  0xba   : > { %2119 = vmatmul.mubr.msk.f32.vlgmr.msra.gmra.mrb[0].mxu1 %vm340_vm0, %v1091_v46 }
  0xbb   : > { %2131 = vmatpush3.msra.mxu1 %v806_v60  ;;  %2121 = vmatprep.mubr.msk.f32.mxu1 %vm340_vm0, %v2909_v48 }
  0xbc   : > { %2181 = vmatmul.mubr.msk.f32.gmra.mrb[4].mxu0 %vm340_vm0, %v380_v4  ;;  %2214 = vmatprep.subr.mxu1 %v2865_v2 }
  0xbd   : > { %2183 = vmatprep.mubr.msk.f32.mxu0 %vm340_vm0, %v1245_v6 }
  0xbe   : > { %2122 = vmatmul.mubr.msk.f32.gmra.mrb[2].mxu1 %vm340_vm0, %v2913_v50 }
  0xbf   : > { %2124 = vmatprep.mubr.msk.f32.mxu1 %vm340_vm0, %v2925_v53 }
  0xc0   : > { %2184 = vmatmul.mubr.msk.f32.gmra.mrb[6].mxu0 %vm340_vm0, %v1246_v7 }
  0xc1   : > { %2188 = vmatprep.mubr.msk.f32.mxu0 %vm340_vm0, %v2888_v41 }
  0xc2   : > { %2125 = vmatmul.mubr.msk.f32.gmra.mrb[4].mxu1 %vm340_vm0, %v2927_v55 }
  0xc3   : > { %2127 = vmatprep.mubr.msk.f32.mxu1 %vm340_vm0, %v2936_v57 }
  0xc4   : > { %2189 = vmatmul.mubr.msk.f32.vlgmr.msra.gmra.mrb[0].mxu0 %vm340_vm0, %v2892_v43 }
  0xc5   : > { %2201 = vmatpush3.msra.mxu0 %v1542_v3  ;;  %2191 = vmatprep.mubr.msk.f32.mxu0 %vm340_vm0, %v2896_v45 }
  0xc6   : > { %2128 = vmatmul.mubr.msk.f32.gmra.mrb[6].mxu1 %vm340_vm0, %v2938_v59 }
  0xc7   : > { %2132 = vmatprep.mubr.msk.f32.mxu1 %vm340_vm0, %v374_v56 }
  0xc8   : > { %2192 = vmatmul.mubr.msk.f32.gmra.mrb[2].mxu0 %vm340_vm0, %v2906_v47 }
  0xc9   : > { %2194 = vmatprep.mubr.msk.f32.mxu0 %vm340_vm0, %v2911_v49 }
  0xca   : > { %2133 = vmatmul.mubr.msk.f32.vlgmr.msra.gmra.mrb[0].mxu1 %vm340_vm0, %v375_v58 }
  0xcb   : > { %2215 = vmatpush3.msra.mxu1 %v2865_v2  ;;  %2135 = vmatprep.mubr.msk.f32.mxu1 %vm340_vm0, %v376_v61  ;;  %v1540_v2 = vld [vmem:[#allocation2 + $0x92] sm:$0xff] }
  0xcc   : > { %2195 = vmatmul.mubr.msk.f32.gmra.mrb[4].mxu0 %vm340_vm0, %v2921_v52 }
  0xcd   : > { %2197 = vmatprep.mubr.msk.f32.mxu0 %vm340_vm0, %v1392_v8 }
  0xce   : > { %2136 = vmatmul.mubr.msk.f32.gmra.mrb[2].mxu1 %vm340_vm0, %v377_v63 }
  0xcf   : > { %2138 = vmatprep.mubr.msk.f32.mxu1 %vm340_vm0, %v378_v0 }
  0xd0   : > { %2198 = vmatmul.mubr.msk.f32.gmra.mrb[6].mxu0 %vm340_vm0, %v1393_v9 }
  0xd1   : > { %2202 = vmatprep.mubr.msk.f32.mxu0 %vm340_vm0, %v2909_v48 }
  0xd2   : > { %2139 = vmatmul.mubr.msk.f32.gmra.mrb[4].mxu1 %vm340_vm0, %v379_v1 }
  0xd3   : > { %2141 = vmatprep.mubr.msk.f32.mxu1 %vm340_vm0, %v380_v4 }
  0xd4   : > { %2203 = vmatmul.mubr.msk.f32.vlgmr.msra.gmra.mrb[0].mxu0 %vm340_vm0, %v2913_v50 }
  0xd5   : > { %2205 = vmatprep.mubr.msk.f32.mxu0 %vm340_vm0, %v2925_v53 }
  0xd6   : > { %2142 = vmatmul.mubr.msk.f32.gmra.mrb[6].mxu1 %vm340_vm0, %v1245_v6 }
  0xd7   : > { %2152 = vmatprep.mubr.msk.f32.mxu1 %vm340_vm0, %v2906_v47 }
  0xd8   : > { %2206 = vmatmul.mubr.msk.f32.gmra.mrb[2].mxu0 %vm340_vm0, %v2927_v55 }
  0xd9   : > { %2208 = vmatprep.mubr.msk.f32.mxu0 %vm340_vm0, %v2936_v57 }
  0xda   : > { %2153 = vmatmul.mubr.msk.f32.vlgmr.msra.gmra.mrb[4].mxu1 %vm340_vm0, %v2911_v49 }
  0xdb   : > { %2155 = vmatprep.mubr.msk.f32.mxu1 %vm340_vm0, %v2921_v52 }
  0xdc   : > { %2209 = vmatmul.mubr.msk.f32.gmra.mrb[4].mxu0 %vm340_vm0, %v2938_v59 }
  0xdd   : > { %2211 = vmatprep.mubr.msk.f32.mxu0 %vm340_vm0, %v2946_v62 }
  0xde   : > { %2156 = vmatmul.mubr.msk.f32.gmra.mrb[6].mxu1 %vm340_vm0, %v1392_v8 }
  0xe0   : > { %2212 = vmatmul.mubr.msk.f32.gmra.mrb[6].mxu0 %vm340_vm0, %v1540_v2 }
 0x19d   : > { %v2134_v10 = vpop.f32.mrb[0].mxu1 }
 0x19e   : > { %v897_v11 = vpop.f32.mrb[1].mxu1 }
 0x1a1   : > { %v2137_v12 = vpop.f32.mrb[2].mxu1 }
 0x1a2   : > { %v907_v13 = vpop.f32.mrb[3].mxu1 }
 0x1a7   : > { %v2204_v14 = vpop.f32.mrb[0].mxu0 }
 0x1a8   : > { %v2216_v15 = vadd.f32 %v2204_v14, %v2134_v10  ;;  %v1633_v16 = vpop.f32.mrb[1].mxu0 }
 0x1a9   : > { %v2217_v17 = vadd.f32 %v1633_v16, %v897_v11 }
 0x1aa   : > { %1681 = vst.msk [vmem:[%s3025_s24 + $0x8] sm:$0xff] %vm340_vm0, %v2216_v15  ;;  %v1689_v18 = vsel %vm340_vm0, %v2216_v15, 0.0  ;;  %v1711_v19 = vmul.f32 %v2216_v15, %v2216_v15 }
 0x1ab   : > { %1680 = vst.msk [vmem:[%s3025_s24] sm:$0xff] %vm340_vm0, %v2217_v17  ;;  %v1688_v20 = vsel %vm340_vm0, %v2217_v17, 0.0  ;;  %v1710_v21 = vmul.f32 %v2217_v17, %v2217_v17  ;;  %v2207_v22 = vpop.f32.mrb[2].mxu0 }
 0x1ac   : > { %v1719_v23 = vsel %vm340_vm0, %v1711_v19, 0.0  ;;  %v1690_v24 = vadd.f32 %v1689_v18, %v1688_v20  ;;  %v2218_v25 = vadd.f32 %v2207_v22, %v2137_v12  ;;  %v1643_v26 = vpop.f32.mrb[3].mxu0 }
 0x1ad   : > { %v1718_v27 = vsel %vm340_vm0, %v1710_v21, 0.0  ;;  %v2219_v28 = vadd.f32 %v1643_v26, %v907_v13  ;;  %v2154_v30 = vpop.f32.mrb[4].mxu1 }
 0x1ae   : > { %v1720_v29 = vadd.f32 %v1719_v23, %v1718_v27  ;;  %1683 = vst.msk [vmem:[%s3025_s24 + $0x18] sm:$0xff] %vm340_vm0, %v2218_v25  ;;  %v1713_v31 = vmul.f32 %v2218_v25, %v2218_v25  ;;  %v1064_v34 = vpop.f32.mrb[5].mxu1  ;;  %v1693_v39 = vsel %vm340_vm0, %v2218_v25, 0.0 }
 0x1af   : > { %1682 = vst.msk [vmem:[%s3025_s24 + $0x10] sm:$0xff] %vm340_vm0, %v2219_v28  ;;  %v1691_v32 = vsel %vm340_vm0, %v2219_v28, 0.0  ;;  %v1712_v33 = vmul.f32 %v2219_v28, %v2219_v28  ;;  %v2210_v35 = vpop.f32.mrb[4].mxu0 }
 0x1b0   : > { %v1692_v36 = vadd.f32 %v1691_v32, %v1690_v24  ;;  %v2220_v37 = vadd.f32 %v2210_v35, %v2154_v30  ;;  %v1653_v38 = vpop.f32.mrb[5].mxu0  ;;  %v1723_v45 = vsel %vm340_vm0, %v1713_v31, 0.0 }
 0x1b1   : > { %v1721_v40 = vsel %vm340_vm0, %v1712_v33, 0.0  ;;  %v2221_v41 = vadd.f32 %v1653_v38, %v1064_v34  ;;  %v2157_v44 = vpop.f32.mrb[6].mxu1 }
 0x1b2   : > { %v1722_v42 = vadd.f32 %v1721_v40, %v1720_v29  ;;  %1685 = vst.msk [vmem:[%s3025_s24 + $0x28] sm:$0xff] %vm340_vm0, %v2220_v37  ;;  %v1694_v43 = vadd.f32 %v1693_v39, %v1692_v36  ;;  %v1715_v46 = vmul.f32 %v2220_v37, %v2220_v37  ;;  %v1074_v49 = vpop.f32.mrb[7].mxu1  ;;  %v1697_v55 = vsel %vm340_vm0, %v2220_v37, 0.0 }
 0x1b3   : > { %1684 = vst.msk [vmem:[%s3025_s24 + $0x20] sm:$0xff] %vm340_vm0, %v2221_v41  ;;  %v1695_v47 = vsel %vm340_vm0, %v2221_v41, 0.0  ;;  %v1714_v48 = vmul.f32 %v2221_v41, %v2221_v41  ;;  %v2213_v50 = vpop.f32.mrb[6].mxu0 }
 0x1b4   : > { %v1696_v51 = vadd.f32 %v1695_v47, %v1694_v43  ;;  %v1724_v52 = vadd.f32 %v1723_v45, %v1722_v42  ;;  %v2222_v53 = vadd.f32 %v2213_v50, %v2157_v44  ;;  %v1663_v54 = vpop.f32.mrb[7].mxu0  ;;  %v1727_v60 = vsel %vm340_vm0, %v1715_v46, 0.0 }
 0x1b5   : > { %v1725_v56 = vsel %vm340_vm0, %v1714_v48, 0.0  ;;  %v2223_v57 = vadd.f32 %v1663_v54, %v1074_v49 }
 0x1b6   : > { %v1726_v58 = vadd.f32 %v1725_v56, %v1724_v52  ;;  %1687 = vst.msk [vmem:[%s3025_s24 + $0x38] sm:$0xff] %vm340_vm0, %v2222_v53  ;;  %v1698_v59 = vadd.f32 %v1697_v55, %v1696_v51  ;;  %v1717_v61 = vmul.f32 %v2222_v53, %v2222_v53 }
 0x1b7   : > { %1686 = vst.msk [vmem:[%s3025_s24 + $0x30] sm:$0xff] %vm340_vm0, %v2223_v57  ;;  %v1699_v62 = vsel %vm340_vm0, %v2223_v57, 0.0  ;;  %v1716_v63 = vmul.f32 %v2223_v57, %v2223_v57 }
 0x1b8   : > { %v1700_v0 = vadd.f32 %v1699_v62, %v1698_v59  ;;  %v1728_v1 = vadd.f32 %v1727_v60, %v1726_v58 }
 0x1b9   : > { %2494 = shalt.err (!%p2491_p13)
}
 0x1ba   : > { %s2495_s7 = scalar_lea.hbm %s3053_s30, 1024  ;;  %s2499_s15 = scalar_lea.hbm %s3149_s4, 2048 }
 0x1bb   : > { %p2496_p0 = scmp.ne.s32.totalorder %s3053_s30, %s2495_s7  ;;  %p2500_p9 = scmp.lt.u32.totalorder %s3053_s30, %s3149_s4 }
 0x1bc   : > { %p2501_p12 = scmp.lt.u32.totalorder %s2499_s15, %s2495_s7  ;;  %p2503_p1 = scmp.lt.u32.totalorder %s2495_s7, %s3053_s30 }
 0x1bd   : > { %p2497_p5 = pnand %p2496_p0, %p2776_p6 }
 0x1be   : > { %p2502_p2 = por %p2501_p12, %p2500_p9 }
 0x1bf   : > { %p2498_p11 = pneg %p2497_p5 }
 0x1c0   : > { %p2504_p4 = por %p2503_p1, %p2502_p2 }
 0x1c2   : > { %p2505_p8 = pnand %p2504_p4, %p2498_p11 }
 0x1c4   : > { %2508 = shalt.err (!%p2505_p8)
}
 0x1c5   : > { %s2597_s14 = smov 128   ;;  %s2598_s11 = smov 8   ;;  %v1701_v3 = vsel %vm340_vm0, %v2222_v53, 0.0  ;;  %v1729_v4 = vsel %vm340_vm0, %v1716_v63, 0.0  ;;  %v1731_v7 = vsel %vm340_vm0, %v1717_v61, 0.0 }
 0x1c6   : > { %2294 = dma.vmem_to_hbm [thread:$0]  (%p2776_p6), %s3055_s13, 1024, %s3053_s30, %s1743_s28, %s2597_s14, %s2597_s14, %s2598_s11   ;;  %v1702_v5 = vadd.f32 %v1701_v3, %v1700_v0  ;;  %v1730_v6 = vadd.f32 %v1729_v4, %v1728_v1 }
 0x1c7   : > { %s1923_s10 = sshll.u32 %s2827_s17, 1  ;;  %s2002_s13 = sshll.u32 %s2651_s22, 5 }
 0x1c8   : > { %v1703_v8 = vsel %vm340_vm0, %v1702_v5, 0.0  ;;  %v1732_v9 = vadd.f32 %v1731_v7, %v1730_v6  ;;  %s293_s30 = scalar_lea.vmem [#allocation12], %s1923_s10  ;;  %s3100_s23 = scalar_lea.hbm %s3150_s5, %s2002_s13 }
 0x1c9   : > { %v1704_v2 = vrot.slane %v1703_v8, 4  ;;  %s1777_s28 = sshll.u32 %s293_s30, 4  ;;  %s1748_s22 = scalar_lea.sflag [#allocation13], %s2827_s17  ;;  %s3102_s28 = int_to_ptr.vmem [resolvable:$true] %s1777_s28 }
 0x1ca   : > { %v1733_v10 = vsel %vm340_vm0, %v1732_v9, 0.0  ;;  %s2509_s7 = scalar_lea.vmem %s3102_s28, 32  ;;  %s2599_s8 = smov [#allocation12]  }
 0x1cb   : > { %v1705_v11 = vadd.f32 %v1704_v2, %v1703_v8  ;;  %v1734_v12 = vrot.slane %v1733_v10, 4  ;;  %p2510_p3 = scmp.ne.s32.totalorder %s3102_s28, %s2509_s7  ;;  %s2513_s9 = sshll.u32 %s2599_s8, 4  ;;  %s2514_s9 = int_to_ptr.vmem [resolvable:$false] %s2513_s9 }
 0x1cc   : > { %s2515_s15 = scalar_lea.vmem %s2514_s9, 64  ;;  %p2516_p13 = scmp.lt.s32.totalorder %s3102_s28, %s2514_s9 }
 0x1cd   : > { %v1706_v13 = vrot.slane %v1705_v11, 2  ;;  %v1735_v14 = vadd.f32 %v1734_v12, %v1733_v10  ;;  %p2511_p7 = pnand %p2510_p3, %p2776_p6  ;;  %p2517_p0 = scmp.lt.s32.totalorder %s2515_s15, %s2509_s7 }
 0x1cf   : > { %v1707_v15 = vadd.f32 %v1706_v13, %v1705_v11  ;;  %v1736_v16 = vrot.slane %v1735_v14, 2  ;;  %p2512_p10 = pneg %p2511_p7  ;;  %p2518_p5 = por %p2517_p0, %p2516_p13 }
 0x1d1   : > { %v1708_v17 = vrot.slane %v1707_v15, 1  ;;  %v1737_v18 = vadd.f32 %v1736_v16, %v1735_v14  ;;  %p2519_p11 = pnand %p2518_p5, %p2512_p10 }
 0x1d3   : > { %v1709_v19 = vadd.f32 %v1708_v17, %v1707_v15  ;;  %v1738_v20 = vrot.slane %v1737_v18, 1 }
 0x1d5   : > { %v1739_v21 = vadd.f32 %v1738_v20, %v1737_v18  ;;  %1740 = vst.msk [vmem:[%s293_s30] sm:$0x1] %vm348_vm2, %v1709_v19 }
 0x1d7   : > { %1741 = vst.msk [vmem:[%s293_s30 + $0x1] sm:$0x1] %vm348_vm2, %v1739_v21 }
 0x1d8   : > { %2522 = shalt.err (!%p2519_p11)
}
 0x1d9   : > { %s2523_s17 = scalar_lea.hbm %s3100_s23, 32  ;;  %s2527_s14 = scalar_lea.hbm %s3150_s5, 64 }
 0x1da   : > { %p2524_p9 = scmp.ne.s32.totalorder %s3100_s23, %s2523_s17  ;;  %p2528_p1 = scmp.lt.u32.totalorder %s3100_s23, %s3150_s5 }
 0x1db   : > { %p2529_p4 = scmp.lt.u32.totalorder %s2527_s14, %s2523_s17  ;;  %p2531_p3 = scmp.lt.u32.totalorder %s2523_s17, %s3100_s23 }
 0x1dc   : > { %p2525_p12 = pnand %p2524_p9, %p2776_p6 }
 0x1dd   : > { %p2530_p8 = por %p2529_p4, %p2528_p1 }
 0x1de   : > { %p2526_p2 = pneg %p2525_p12 }
 0x1df   : > { %p2532_p7 = por %p2531_p3, %p2530_p8 }
 0x1e1   : > { %p2533_p10 = pnand %p2532_p7, %p2526_p2 }
 0x1e3   : > { %2536 = shalt.err (!%p2533_p10)
}
 0x1e4   : > { %2295 = dma.vmem_to_hbm [thread:$0]  (%p2776_p6), %s3102_s28, 32, %s3100_s23, %s1748_s22  }
 0x1e5 PF: > { %s1789_s13 = sand.u32 1, %s2575_s18   ;;  %p3168_p13 = scmp.ne.s32.totalorder %s3155_s25, 0 }
 0x1e6   : > { %p3169_p0 = scmp.ge.s32.totalorder %s2587_s21, 2  ;;  %s1790_s30 = scalar_lea.sflag [#allocation5], %s1789_s13 }
 0x1e8   : > { %p2313_p5 = pnand %p3169_p0, %p3168_p13 }
 0x1ea   : > { %2566 = dma.done.wait (!%p2313_p5), %s1790_s30, 1024  }
 0x1eb   : > { %2568 = vsyncadd (!%p2313_p5), %s1790_s30, 4294966272  ;;  %s1799_s29 = scalar_lea.sflag [#allocation13], %s1789_s13 }
 0x1ec   : > { %2570 = dma.done.wait (!%p2313_p5), %s1799_s29, 32  }
 0x1ed   : > { %2572 = vsyncadd (!%p2313_p5), %s1799_s29, 4294967264  ;;  %p24_p6 = scmp.ge.s32.totalorder %s2762_s16, 4   ;;  %s3170_s18 = smov %s2579_s19 }
 0x1ee   : > { %s3171_s19 = smov %s2583_s20  ;;  %s3172_s20 = smov %s2772_s27 }
 0x1ef   : > { %s3173_s21 = smov %s2762_s16  ;;  %26 = sbr.rel (!%p24_p6) target bundleno = 9 (0x9), region = 121 }
 0x1f6   :  { %1804 = vsyncpa [#allocation4], 1 }
 0x1f7   :  { %1806 = vsyncpa [#allocation4 + $0x1], 1 }
 0x1f8   :  { %1807 = vsyncpa [#allocation7], 1 }
 0x1f9   :  { %1808 = vsyncpa [#allocation10], 1 }
 0x1fa   :  { %1809 = vsyncpa [#allocation5], 1 }
 0x1fb   :  { %1811 = vsyncpa [#allocation5 + $0x1], 1 }
 0x1fc   :  { %1812 = vsyncpa [#allocation13], 1 }
 0x1fd   :  { %1814 = vsyncpa [#allocation13 + $0x1], 1 }

// kernel: _lambda_.2
= control target key start
LH: loop header
LB: loop body
LE: loop exit
PB: predicated region body
PF: predicated region fallthrough
CT: control target
= control target key end

     0   :  { %9 = vsyncpa [#allocation4], 0  ;;  %s2910_s0 = inlined_call_operand.hbm [shape: f32[2,8,8,4], index: 0, kind: input, shape index: {}]   ;;  %s2911_s1 = inlined_call_operand.hbm [shape: f32[3,3,4,8], index: 1, kind: input, shape index: {}]   ;;  %s2912_s2 = inlined_call_operand.hbm [shape: f32[2,8,8,8], index: 2, kind: output, shape index: {0}]   ;;  %s2913_s3 = inlined_call_operand.hbm [shape: f32[2,2,8], index: 3, kind: output, shape index: {1}]  }
   0x1   :  { %11 = vsyncpa [#allocation4 + $0x1], 0 }
   0x2   :  { %12 = vsyncpa [#allocation7], 0 }
   0x3   :  { %13 = vsyncpa [#allocation5], 0 }
   0x4   :  { %15 = vsyncpa [#allocation5 + $0x1], 0 }
   0x5   :  { %16 = vsyncpa [#allocation10], 0 }
   0x6   :  { %18 = vsyncpa [#allocation10 + $0x1], 0  ;;  %s2439_s12 = smov 0   ;;  %s2441_s13 = smov 0  }
   0x7   :  { %s2443_s14 = smov 0   ;;  %s2445_s15 = smov 0  }
   0x8 LB: > { %s2460_s16 = sadd.s32 4294967295, %s2406_s15   ;;  %s1802_s17 = sadd.s32 4294967294, %s2406_s15   ;;  %s2406_s15 = sphi %s2445_s15, %s2933_s15   ;;  %s2402_s14 = sphi %s2443_s14, %s2932_s14   ;;  %s2398_s13 = sphi %s2441_s13, %s2931_s13   ;;  %s2394_s12 = sphi %s2439_s12, %s2930_s12  }
   0x9   : > { %p44_p0 = scmp.ne.s32.totalorder %s2398_s13, %s2394_s12  ;;  %p2914_p1 = scmp.eq.s32.totalorder %s2460_s16, 0 }
   0xa   : > { %p95_p3 = scmp.eq.s32.totalorder %s1802_s17, 1  ;;  %p1803_p5 = scmp.ge.s32.totalorder %s2406_s15, 1 }
   0xb   : > { %p2469_p4 = por %p2914_p1, %p44_p0  ;;  %p128_p7 = scmp.lt.s32.totalorder %s2406_s15, 3 }
   0xc   : > { %p2474_p6 = por %p95_p3, %p44_p0  ;;  %s2408_s21 = smov [#allocation6]  }
   0xd   : > { %s2917_s18 = scalar_select %p2469_p4, 1, 0 }
   0xe   : > { %s2918_s19 = scalar_select %p2474_p6, 1, 0 }
   0xf   : > { %p2479_p8 = pnand %p1803_p5, %p128_p7  ;;  %s140_s22 = sshll.u32 %s2408_s21, 4  ;;  %s2483_s22 = int_to_ptr.vmem [resolvable:$true] %s140_s22 }
  0x10   : > { %s2495_s24 = sadd.s32 1, %s2406_s15   ;;  %s31_s25 = sadd.s32 1, %s2402_s14 }
  0x11   : > { %s2919_s20 = scalar_select %p2479_p8, 1, 0 }
  0x12   : > { %p2187_p9 = pneg %p2479_p8  ;;  %s28_s26 = ssub.s32 %s2406_s15, %s2495_s24 }
  0x13   : > { %s2246_s29 = scalar_lea.hbm %s2911_s1, 576 }
  0x14   : > { %p2490_p11 = pnand %p2187_p9, %p2914_p1  ;;  %p2247_p12 = scmp.ne.s32.totalorder %s2911_s1, %s2246_s29 }
  0x15   : > { %p2253_p5 = scmp.lt.u32.totalorder %s2246_s29, %s2911_s1 }
  0x16   : > { %p2248_p13 = pneg %p2490_p11 }
  0x18   : > { %p2249_p0 = pnand %p2248_p13, %p2247_p12 }
  0x1a   : > { %p2250_p3 = pneg %p2249_p0 }
  0x1c   : > { %p2255_p7 = pnand %p2253_p5, %p2250_p3 }
  0x1e   : > { %2258 = shalt.err (!%p2255_p7)
}
  0x1f   : > { %s2259_s7 = scalar_lea.vmem %s2483_s22, 576  ;;  %p2267_p2 = scmp.lt.s32.totalorder %s2483_s22, %s2483_s22 }
  0x20   : > { %p2260_p9 = scmp.ne.s32.totalorder %s2483_s22, %s2259_s7  ;;  %p2268_p6 = scmp.lt.s32.totalorder %s2259_s7, %s2259_s7 }
  0x22   : > { %p2262_p10 = pnand %p2260_p9, %p2248_p13  ;;  %p2269_p4 = por %p2268_p6, %p2267_p2 }
  0x24   : > { %p2263_p1 = pneg %p2262_p10 }
  0x26   : > { %p2270_p8 = pnand %p2269_p4, %p2263_p1 }
  0x28   : > { %2273 = shalt.err (!%p2270_p8)
}
  0x29   : > { %s2409_s8 = smov 64   ;;  %s2410_s9 = smov 4  }
  0x2a   : > { %2190 = dma.hbm_to_vmem [thread:$0]  (!%p2490_p11), %s2911_s1, 576, %s2483_s22, [#allocation7], %s2409_s8, %s2409_s8, %s2410_s9  }
  0x2b   : > { %p29_p2 = scmp.eq.s32.totalorder %s28_s26, 0  ;;  %p38_p1 = scmp.ne.s32.totalorder %s2402_s14, %s2398_s13 }
  0x2c   : > { %p39_p4 = scmp.eq.s32.totalorder %s2406_s15, 0  ;;  %p2203_p6 = scmp.lt.s32.totalorder %s2406_s15, 2 }
  0x2d   : > { %s2526_s17 = scalar_select %p29_p2, %s2402_s14, %s31_s25  }
  0x2e   : > { %p40_p8 = por %p39_p4, %p38_p1  ;;  %p2921_p10 = scmp.eq.s32.totalorder %s2460_s16, 1 }
  0x2f   : > { %s154_s27 = sand.u32 1, %s2402_s14   ;;  %s1902_s28 = sshll.u32 %s2406_s15, 10 }
  0x30   : > { %p2530_p12 = por %p2921_p10, %p38_p1  ;;  %s1806_s29 = sshll.u32 %s154_s27, 6 }
  0x31   : > { %s2539_s4 = scalar_lea.hbm %s2910_s0, %s1902_s28  ;;  %s158_s22 = scalar_lea.vmem [#allocation3], %s1806_s29 }
  0x32   : > { %s165_s25 = sshll.u32 %s158_s22, 4  ;;  %p2541_p11 = pnand %p2203_p6, %p40_p8  ;;  %s2545_s25 = int_to_ptr.vmem [resolvable:$true] %s165_s25 }
  0x33   : > { %s2547_s5 = scalar_lea.sflag [#allocation4], %s154_s27  ;;  %s2274_s6 = scalar_lea.hbm %s2539_s4, 1024 }
  0x34   : > { %p2275_p13 = scmp.ne.s32.totalorder %s2539_s4, %s2274_s6  ;;  %p2276_p0 = pneg %p2541_p11 }
  0x35   : > { %s2279_s9 = scalar_lea.hbm %s2910_s0, 2048  ;;  %p2280_p7 = scmp.lt.u32.totalorder %s2539_s4, %s2910_s0 }
  0x36   : > { %p2277_p3 = pnand %p2276_p0, %p2275_p13  ;;  %p2281_p9 = scmp.lt.u32.totalorder %s2279_s9, %s2274_s6 }
  0x37   : > { %p2283_p1 = scmp.lt.u32.totalorder %s2274_s6, %s2539_s4 }
  0x38   : > { %p2278_p5 = pneg %p2277_p3  ;;  %p2282_p2 = por %p2281_p9, %p2280_p7 }
  0x3a   : > { %p2284_p4 = por %p2283_p1, %p2282_p2 }
  0x3c   : > { %p2285_p6 = pnand %p2284_p4, %p2278_p5 }
  0x3e   : > { %2288 = shalt.err (!%p2285_p6)
}
  0x3f   : > { %s2289_s27 = scalar_lea.vmem %s2545_s25, 1024  ;;  %s2411_s28 = smov [#allocation3]  }
  0x40   : > { %p2290_p8 = scmp.ne.s32.totalorder %s2545_s25, %s2289_s27  ;;  %s2294_s29 = sshll.u32 %s2411_s28, 4  ;;  %s2295_s29 = int_to_ptr.vmem [resolvable:$false] %s2294_s29 }
  0x41   : > { %s2296_s23 = scalar_lea.vmem %s2295_s29, 2048  ;;  %p2297_p3 = scmp.lt.s32.totalorder %s2545_s25, %s2295_s29 }
  0x42   : > { %p2292_p10 = pnand %p2290_p8, %p2276_p0  ;;  %p2298_p7 = scmp.lt.s32.totalorder %s2296_s23, %s2289_s27 }
  0x44   : > { %p2293_p13 = pneg %p2292_p10  ;;  %p2299_p9 = por %p2298_p7, %p2297_p3 }
  0x46   : > { %p2300_p2 = pnand %p2299_p9, %p2293_p13 }
  0x48   : > { %2303 = shalt.err (!%p2300_p2)
}
  0x49   : > { %s2412_s30 = smov 128   ;;  %s2413_s22 = smov 8  }
  0x4a   : > { %2194 = dma.hbm_to_vmem [thread:$0]  (!%p2541_p11), %s2539_s4, 1024, %s2545_s25, %s2547_s5, %s2412_s30, %s2412_s30, %s2413_s22  }
  0x4b   : > { %p2924_p0 = scmp.ne.s32.totalorder %s2919_s20, 0 }
  0x4c   : > { %s2578_s6 = sand.u32 (!%p2924_p0), 1, %s2398_s13   ;;  %p2925_p5 = scmp.ne.s32.totalorder (!%p2924_p0), %s2917_s18, 0 }
  0x4d   : > { %177 = sbr.rel (%p2924_p0) target bundleno = 437 (0x1b5), region = 28  ;;  %s1810_s7 = sshll.u32 (!%p2924_p0), %s2578_s6, 6 }
  0x4e   : > { %s180_s8 = scalar_lea.sflag (!%p2924_p0), [#allocation4], %s2578_s6  ;;  %s2584_s9 = scalar_lea.vmem (!%p2924_p0), [#allocation3], %s1810_s7 }
  0x54   : > { %2377 = dma.done.wait (%p2925_p5), %s180_s8, 1024  }
  0x55   : > { %2379 = vsyncadd (%p2925_p5), %s180_s8, 4294966272  ;;  %p2926_p11 = scmp.eq.s32.totalorder %s2460_s16, 0 }
  0x57   : > { %2381 = dma.done.wait (%p2926_p11), [#allocation7], 576   ;;  %p2927_p1 = pmov %p2926_p11 }
  0x58   : > { %vm215_vm0 = vcmask 31744   ;;  %vm217_vm1 = vcmask 25600   ;;  %v2414_v0 = vmov 0.0   ;;  %vm223_vm2 = vcmask 24576   ;;  %v274_v1 = vld [vmem:[#allocation6 + $0x4] sm:$0xf] }
  0x59   : > { %2383 = vsyncadd (%p2927_p1), [#allocation7], 4294966720  ;;  %216 = vst.msk [vmem:[#allocation2] sm:$0xff] %vm215_vm0, %v2414_v0  ;;  %vm299_vm3 = vcmask 1043456   ;;  %v2612_v2 = vld [vmem:[#allocation6 + $0x10] sm:$0xf] }
  0x5a   : > { %218 = vst.msk [vmem:[#allocation2 + $0x8] sm:$0x3] %vm217_vm1, %v2414_v0  ;;  %221 = vst.msk [vmem:[#allocation2 + $0x98] sm:$0x3] %vm217_vm1, %v2414_v0  ;;  %v240_v3 = vld [vmem:[%s2584_s9] sm:$0xff]  ;;  %1985 = vmatprep.subr.msk.mxu1 %vm299_vm3, %v274_v1  ;;  %2041 = vmatprep.subr.msk.mxu0 %vm299_vm3, %v2612_v2  ;;  %v241_v7 = vld [vmem:[%s2584_s9 + $0x8] sm:$0xff] }
  0x5b   : > { %220 = vst.msk [vmem:[#allocation2 + $0x90] sm:$0xff] %vm215_vm0, %v2414_v0  ;;  %248 = vst.msk [vmem:[#allocation2 + $0x11] sm:$0xff] %vm215_vm0, %v240_v3  ;;  %v264_v5 = vld [vmem:[#allocation6] sm:$0xf]  ;;  %v999_v6 = vld [vmem:[#allocation6 + $0x14] sm:$0xf]  ;;  %1986 = vmatpush3.msk.msra.mxu1 %vm299_vm3, %v274_v1  ;;  %2042 = vmatpush3.msk.msra.mxu0 %vm299_vm3, %v2612_v2 }
  0x5c   : > { %232 = vst.msk [vmem:[#allocation2 + $0x19] sm:$0x1] %vm223_vm2, %v2414_v0  ;;  %224 = vst.msk [vmem:[#allocation2 + $0x10] sm:$0x1] %vm223_vm2, %v2414_v0  ;;  %v242_v8 = vld [vmem:[%s2584_s9 + $0x10] sm:$0xff]  ;;  %v243_v9 = vld [vmem:[%s2584_s9 + $0x18] sm:$0xff]  ;;  %1999 = vmatprep.subr.msk.mxu1 %vm299_vm3, %v264_v5  ;;  %2055 = vmatprep.subr.msk.mxu0 %vm299_vm3, %v999_v6 }
  0x5d   : > { %225 = vst.msk [vmem:[#allocation2 + $0x20] sm:$0x1] %vm223_vm2, %v2414_v0  ;;  %226 = vst.msk [vmem:[#allocation2 + $0x30] sm:$0x1] %vm223_vm2, %v2414_v0  ;;  %v244_v10 = vld [vmem:[%s2584_s9 + $0x20] sm:$0xff]  ;;  %v245_v11 = vld [vmem:[%s2584_s9 + $0x28] sm:$0xff] }
  0x5e   : > { %227 = vst.msk [vmem:[#allocation2 + $0x40] sm:$0x1] %vm223_vm2, %v2414_v0  ;;  %228 = vst.msk [vmem:[#allocation2 + $0x50] sm:$0x1] %vm223_vm2, %v2414_v0  ;;  %v246_v12 = vld [vmem:[%s2584_s9 + $0x30] sm:$0xff]  ;;  %v247_v13 = vld [vmem:[%s2584_s9 + $0x38] sm:$0xff] }
  0x5f   : > { %229 = vst.msk [vmem:[#allocation2 + $0x60] sm:$0x1] %vm223_vm2, %v2414_v0  ;;  %230 = vst.msk [vmem:[#allocation2 + $0x70] sm:$0x1] %vm223_vm2, %v2414_v0  ;;  %v1150_v17 = vld [vmem:[#allocation6 + $0x18] sm:$0xf] }
  0x60   : > { %231 = vst.msk [vmem:[#allocation2 + $0x80] sm:$0x1] %vm223_vm2, %v2414_v0  ;;  %233 = vst.msk [vmem:[#allocation2 + $0x29] sm:$0x1] %vm223_vm2, %v2414_v0  ;;  %v549_v18 = vld [vmem:[#allocation6 + $0x8] sm:$0xf] }
  0x61   : > { %234 = vst.msk [vmem:[#allocation2 + $0x39] sm:$0x1] %vm223_vm2, %v2414_v0  ;;  %235 = vst.msk [vmem:[#allocation2 + $0x49] sm:$0x1] %vm223_vm2, %v2414_v0  ;;  %v265_v4 = vld [vmem:[#allocation2 + $0x1] sm:$0xff]  ;;  %vm1591_vm4 = vcmask 64512  }
  0x62   : > { %236 = vst.msk [vmem:[#allocation2 + $0x59] sm:$0x1] %vm223_vm2, %v2414_v0  ;;  %237 = vst.msk [vmem:[#allocation2 + $0x69] sm:$0x1] %vm223_vm2, %v2414_v0  ;;  %1987 = vmatprep.mubr.msk.f32.mxu1 %vm215_vm0, %v265_v4  ;;  %v266_v14 = vld [vmem:[#allocation2 + $0x11] sm:$0xff]  ;;  %v256_v27 = vld [vmem:[#allocation2] sm:$0xff] }
  0x63   : > { %238 = vst.msk [vmem:[#allocation2 + $0x79] sm:$0x1] %vm223_vm2, %v2414_v0  ;;  %239 = vst.msk [vmem:[#allocation2 + $0x89] sm:$0x1] %vm223_vm2, %v2414_v0  ;;  %1988 = vmatmul.mubr.msk.f32.vlgmr.msra.gmra.mrb[0].mxu1 %vm215_vm0, %v266_v14  ;;  %2043 = vmatprep.mubr.msk.f32.mxu0 %vm215_vm0, %v266_v14  ;;  %v990_v20 = vld [vmem:[#allocation2 + $0x12] sm:$0xff]  ;;  %v540_v42 = vld [vmem:[#allocation2 + $0x2] sm:$0xff] }
  0x64   : > { %249 = vst.msk [vmem:[#allocation2 + $0x21] sm:$0xff] %vm215_vm0, %v241_v7  ;;  %250 = vst.msk [vmem:[#allocation2 + $0x31] sm:$0xff] %vm215_vm0, %v242_v8  ;;  %2000 = vmatpush3.msk.msra.mxu1 %vm299_vm3, %v264_v5  ;;  %v1300_v26 = vld [vmem:[#allocation6 + $0x1c] sm:$0xf]  ;;  %v257_v30 = vld [vmem:[#allocation2 + $0x10] sm:$0xff]  ;;  %s2792_s18 = scalar_lea.vmem [#allocation8], %s1810_s7 }
  0x65   : > { %251 = vst.msk [vmem:[#allocation2 + $0x41] sm:$0xff] %vm215_vm0, %v243_v9  ;;  %252 = vst.msk [vmem:[#allocation2 + $0x51] sm:$0xff] %vm215_vm0, %v244_v10  ;;  %2013 = vmatprep.subr.msk.mxu1 %vm299_vm3, %v549_v18  ;;  %v699_v33 = vld [vmem:[#allocation6 + $0xc] sm:$0xf]  ;;  %v1450_v41 = vld [vmem:[#allocation6 + $0x20] sm:$0xf] }
  0x66   : > { %253 = vst.msk [vmem:[#allocation2 + $0x61] sm:$0xff] %vm215_vm0, %v245_v11  ;;  %254 = vst.msk [vmem:[#allocation2 + $0x71] sm:$0xff] %vm215_vm0, %v246_v12  ;;  %v1148_v44 = vld [vmem:[#allocation2 + $0x90] sm:$0xff]  ;;  %s1903_s20 = sshll.u32 %s2460_s16, 10  ;;  %s1674_s4 = sshll.u32 %s2792_s18, 4  ;;  %s2822_s4 = int_to_ptr.vmem [resolvable:$true] %s1674_s4 }
  0x67   : > { %255 = vst.msk [vmem:[#allocation2 + $0x81] sm:$0xff] %vm215_vm0, %v247_v13  ;;  %v1298_v46 = vld [vmem:[#allocation2 + $0x91] sm:$0xff]  ;;  %s2820_s5 = scalar_lea.hbm %s2912_s2, %s1903_s20  ;;  %s1656_s10 = scalar_lea.sflag [#allocation5], %s2578_s6 }
  0x68   : > { %v1448_v47 = vld [vmem:[#allocation2 + $0x92] sm:$0xff]  ;;  %s2304_s11 = scalar_lea.vmem %s2822_s4, 1024  ;;  %s2415_s27 = smov [#allocation8]  }
  0x69   : > { %p2305_p4 = scmp.ne.s32.totalorder %s2822_s4, %s2304_s11  ;;  %s2308_s28 = sshll.u32 %s2415_s27, 4  ;;  %s2309_s28 = int_to_ptr.vmem [resolvable:$false] %s2308_s28 }
  0x6a   : > { %s2310_s29 = scalar_lea.vmem %s2309_s28, 2048  ;;  %p2311_p10 = scmp.lt.s32.totalorder %s2822_s4, %s2309_s28 }
  0x6b   : > { %v2642_v15 = vld [vmem:[#allocation2 + $0x21] sm:$0xff]  ;;  %v2644_v16 = vld [vmem:[#allocation2 + $0x31] sm:$0xff]  ;;  %p2306_p6 = pnand %p2305_p4, %p2530_p12  ;;  %p2312_p13 = scmp.lt.s32.totalorder %s2310_s29, %s2304_s11 }
  0x6c   : > { %2044 = vmatmul.mubr.msk.f32.vlgmr.msra.gmra.mrb[0].mxu0 %vm215_vm0, %v2642_v15  ;;  %1990 = vmatprep.mubr.msk.f32.mxu1 %vm215_vm0, %v2642_v15  ;;  %v2653_v19 = vld [vmem:[#allocation2 + $0x41] sm:$0xff]  ;;  %v2660_v21 = vld [vmem:[#allocation2 + $0x51] sm:$0xff] }
  0x6d   : > { %2056 = vmatpush3.msk.msra.mxu0 %vm299_vm3, %v999_v6  ;;  %2046 = vmatprep.mubr.msk.f32.mxu0 %vm215_vm0, %v2644_v16  ;;  %v2665_v22 = vld [vmem:[#allocation2 + $0x61] sm:$0xff]  ;;  %v2672_v24 = vld [vmem:[#allocation2 + $0x32] sm:$0xff]  ;;  %p2307_p8 = pneg %p2306_p6  ;;  %p2313_p3 = por %p2312_p13, %p2311_p10 }
  0x6e   : > { %1991 = vmatmul.mubr.msk.f32.gmra.mrb[2].mxu1 %vm215_vm0, %v2644_v16  ;;  %2069 = vmatprep.subr.msk.mxu0 %vm299_vm3, %v1150_v17  ;;  %v2668_v23 = vld [vmem:[#allocation2 + $0x22] sm:$0xff]  ;;  %v2676_v25 = vld [vmem:[#allocation2 + $0x71] sm:$0xff] }
  0x6f   : > { %1993 = vmatprep.mubr.msk.f32.mxu1 %vm215_vm0, %v2653_v19  ;;  %v2683_v28 = vld [vmem:[#allocation2 + $0x42] sm:$0xff]  ;;  %v2687_v29 = vld [vmem:[#allocation2 + $0x52] sm:$0xff]  ;;  %p2314_p7 = pnand %p2313_p3, %p2307_p8 }
  0x70   : > { %2047 = vmatmul.mubr.msk.f32.gmra.mrb[2].mxu0 %vm215_vm0, %v2653_v19  ;;  %v258_v31 = vld [vmem:[#allocation2 + $0x20] sm:$0xff]  ;;  %v2698_v34 = vld [vmem:[#allocation2 + $0x72] sm:$0xff] }
  0x71   : > { %2057 = vmatprep.mubr.msk.f32.mxu0 %vm215_vm0, %v990_v20  ;;  %v2695_v32 = vld [vmem:[#allocation2 + $0x62] sm:$0xff]  ;;  %v259_v35 = vld [vmem:[#allocation2 + $0x30] sm:$0xff] }
  0x72   : > { %1994 = vmatmul.mubr.msk.f32.gmra.mrb[4].mxu1 %vm215_vm0, %v2660_v21  ;;  %v260_v36 = vld [vmem:[#allocation2 + $0x40] sm:$0xff]  ;;  %v261_v38 = vld [vmem:[#allocation2 + $0x50] sm:$0xff] }
  0x73   : > { %1996 = vmatprep.mubr.msk.f32.mxu1 %vm215_vm0, %v2665_v22  ;;  %v2707_v37 = vld [vmem:[#allocation2 + $0x82] sm:$0xff]  ;;  %v263_v40 = vld [vmem:[#allocation2 + $0x70] sm:$0xff] }
  0x74   : > { %2058 = vmatmul.mubr.msk.f32.vlgmr.msra.gmra.mrb[0].mxu0 %vm215_vm0, %v2668_v23  ;;  %v262_v39 = vld [vmem:[#allocation2 + $0x60] sm:$0xff] }
  0x75   : > { %2070 = vmatpush3.msk.msra.mxu0 %vm299_vm3, %v1150_v17  ;;  %2060 = vmatprep.mubr.msk.f32.mxu0 %vm215_vm0, %v2672_v24  ;;  %v1147_v43 = vld [vmem:[#allocation2 + $0x80] sm:$0xff] }
  0x76   : > { %1997 = vmatmul.mubr.msk.f32.gmra.mrb[6].mxu1 %vm215_vm0, %v2676_v25  ;;  %2083 = vmatprep.subr.msk.mxu0 %vm299_vm3, %v1300_v26  ;;  %v1297_v45 = vld [vmem:[#allocation2 + $0x81] sm:$0xff] }
  0x77   : > { %2001 = vmatprep.mubr.msk.f32.mxu1 %vm215_vm0, %v256_v27 }
  0x78   : > { %2061 = vmatmul.mubr.msk.f32.gmra.mrb[2].mxu0 %vm215_vm0, %v2683_v28 }
  0x79   : > { %2063 = vmatprep.mubr.msk.f32.mxu0 %vm215_vm0, %v2687_v29 }
  0x7a   : > { %2002 = vmatmul.mubr.msk.f32.vlgmr.msra.gmra.mrb[0].mxu1 %vm215_vm0, %v257_v30 }
  0x7b   : > { %2014 = vmatpush3.msk.msra.mxu1 %vm299_vm3, %v549_v18  ;;  %2004 = vmatprep.mubr.msk.f32.mxu1 %vm215_vm0, %v258_v31 }
  0x7c   : > { %2064 = vmatmul.mubr.msk.f32.gmra.mrb[4].mxu0 %vm215_vm0, %v2695_v32  ;;  %2027 = vmatprep.subr.msk.mxu1 %vm299_vm3, %v699_v33 }
  0x7d   : > { %2066 = vmatprep.mubr.msk.f32.mxu0 %vm215_vm0, %v2698_v34 }
  0x7e   : > { %2005 = vmatmul.mubr.msk.f32.gmra.mrb[2].mxu1 %vm215_vm0, %v259_v35 }
  0x7f   : > { %2007 = vmatprep.mubr.msk.f32.mxu1 %vm215_vm0, %v260_v36 }
  0x80   : > { %2067 = vmatmul.mubr.msk.f32.gmra.mrb[6].mxu0 %vm215_vm0, %v2707_v37 }
  0x81   : > { %2071 = vmatprep.mubr.msk.f32.mxu0 %vm215_vm0, %v258_v31 }
  0x82   : > { %2008 = vmatmul.mubr.msk.f32.gmra.mrb[4].mxu1 %vm215_vm0, %v261_v38 }
  0x83   : > { %2010 = vmatprep.mubr.msk.f32.mxu1 %vm215_vm0, %v262_v39 }
  0x84   : > { %2072 = vmatmul.mubr.msk.f32.vlgmr.msra.gmra.mrb[0].mxu0 %vm215_vm0, %v259_v35 }
  0x85   : > { %2084 = vmatpush3.msk.msra.mxu0 %vm299_vm3, %v1300_v26  ;;  %2074 = vmatprep.mubr.msk.f32.mxu0 %vm215_vm0, %v260_v36 }
  0x86   : > { %2011 = vmatmul.mubr.msk.f32.gmra.mrb[6].mxu1 %vm215_vm0, %v263_v40  ;;  %2097 = vmatprep.subr.msk.mxu0 %vm299_vm3, %v1450_v41 }
  0x87   : > { %2015 = vmatprep.mubr.msk.f32.mxu1 %vm215_vm0, %v540_v42 }
  0x88   : > { %2075 = vmatmul.mubr.msk.f32.gmra.mrb[2].mxu0 %vm215_vm0, %v261_v38 }
  0x89   : > { %2077 = vmatprep.mubr.msk.f32.mxu0 %vm215_vm0, %v262_v39 }
  0x8a   : > { %2016 = vmatmul.mubr.msk.f32.vlgmr.msra.gmra.mrb[0].mxu1 %vm215_vm0, %v990_v20 }
  0x8b   : > { %2028 = vmatpush3.msk.msra.mxu1 %vm299_vm3, %v699_v33  ;;  %2018 = vmatprep.mubr.msk.f32.mxu1 %vm215_vm0, %v2668_v23 }
  0x8c   : > { %2078 = vmatmul.mubr.msk.f32.gmra.mrb[4].mxu0 %vm215_vm0, %v263_v40  ;;  %2111 = vmatprep.subr.msk.mxu1 %vm299_vm3, %v2612_v2 }
  0x8d   : > { %2080 = vmatprep.mubr.msk.f32.mxu0 %vm215_vm0, %v1147_v43 }
  0x8e   : > { %2019 = vmatmul.mubr.msk.f32.gmra.mrb[2].mxu1 %vm215_vm0, %v2672_v24 }
  0x8f   : > { %2021 = vmatprep.mubr.msk.f32.mxu1 %vm215_vm0, %v2683_v28 }
  0x90   : > { %2081 = vmatmul.mubr.msk.f32.gmra.mrb[6].mxu0 %vm215_vm0, %v1148_v44 }
  0x91   : > { %2085 = vmatprep.mubr.msk.f32.mxu0 %vm215_vm0, %v2642_v15 }
  0x92   : > { %2022 = vmatmul.mubr.msk.f32.gmra.mrb[4].mxu1 %vm215_vm0, %v2687_v29 }
  0x93   : > { %2024 = vmatprep.mubr.msk.f32.mxu1 %vm215_vm0, %v2695_v32 }
  0x94   : > { %2086 = vmatmul.mubr.msk.f32.vlgmr.msra.gmra.mrb[0].mxu0 %vm215_vm0, %v2644_v16 }
  0x95   : > { %2098 = vmatpush3.msk.msra.mxu0 %vm299_vm3, %v1450_v41  ;;  %2088 = vmatprep.mubr.msk.f32.mxu0 %vm215_vm0, %v2653_v19 }
  0x96   : > { %2025 = vmatmul.mubr.msk.f32.gmra.mrb[6].mxu1 %vm215_vm0, %v2698_v34 }
  0x97   : > { %2029 = vmatprep.mubr.msk.f32.mxu1 %vm215_vm0, %v257_v30 }
  0x98   : > { %2089 = vmatmul.mubr.msk.f32.gmra.mrb[2].mxu0 %vm215_vm0, %v2660_v21 }
  0x99   : > { %2091 = vmatprep.mubr.msk.f32.mxu0 %vm215_vm0, %v2665_v22 }
  0x9a   : > { %2030 = vmatmul.mubr.msk.f32.vlgmr.msra.gmra.mrb[0].mxu1 %vm215_vm0, %v258_v31 }
  0x9b   : > { %2112 = vmatpush3.msk.msra.mxu1 %vm299_vm3, %v2612_v2  ;;  %2032 = vmatprep.mubr.msk.f32.mxu1 %vm215_vm0, %v259_v35 }
  0x9c   : > { %2092 = vmatmul.mubr.msk.f32.gmra.mrb[4].mxu0 %vm215_vm0, %v2676_v25 }
  0x9d   : > { %2094 = vmatprep.mubr.msk.f32.mxu0 %vm215_vm0, %v1297_v45 }
  0x9e   : > { %2033 = vmatmul.mubr.msk.f32.gmra.mrb[2].mxu1 %vm215_vm0, %v260_v36 }
  0x9f   : > { %2035 = vmatprep.mubr.msk.f32.mxu1 %vm215_vm0, %v261_v38 }
  0xa0   : > { %2095 = vmatmul.mubr.msk.f32.gmra.mrb[6].mxu0 %vm215_vm0, %v1298_v46 }
  0xa1   : > { %2099 = vmatprep.mubr.msk.f32.mxu0 %vm215_vm0, %v2668_v23 }
  0xa2   : > { %2036 = vmatmul.mubr.msk.f32.gmra.mrb[4].mxu1 %vm215_vm0, %v262_v39 }
  0xa3   : > { %2038 = vmatprep.mubr.msk.f32.mxu1 %vm215_vm0, %v263_v40 }
  0xa4   : > { %2100 = vmatmul.mubr.msk.f32.vlgmr.msra.gmra.mrb[0].mxu0 %vm215_vm0, %v2672_v24 }
  0xa5   : > { %2102 = vmatprep.mubr.msk.f32.mxu0 %vm215_vm0, %v2683_v28 }
  0xa6   : > { %2039 = vmatmul.mubr.msk.f32.gmra.mrb[6].mxu1 %vm215_vm0, %v1147_v43 }
  0xa7   : > { %2049 = vmatprep.mubr.msk.f32.mxu1 %vm215_vm0, %v2660_v21 }
  0xa8   : > { %2103 = vmatmul.mubr.msk.f32.gmra.mrb[2].mxu0 %vm215_vm0, %v2687_v29 }
  0xa9   : > { %2105 = vmatprep.mubr.msk.f32.mxu0 %vm215_vm0, %v2695_v32 }
  0xaa   : > { %2050 = vmatmul.mubr.msk.f32.vlgmr.msra.gmra.mrb[4].mxu1 %vm215_vm0, %v2665_v22 }
  0xab   : > { %2052 = vmatprep.mubr.msk.f32.mxu1 %vm215_vm0, %v2676_v25 }
  0xac   : > { %2106 = vmatmul.mubr.msk.f32.gmra.mrb[4].mxu0 %vm215_vm0, %v2698_v34 }
  0xad   : > { %2108 = vmatprep.mubr.msk.f32.mxu0 %vm215_vm0, %v2707_v37 }
  0xae   : > { %2053 = vmatmul.mubr.msk.f32.gmra.mrb[6].mxu1 %vm215_vm0, %v1297_v45 }
  0xb0   : > { %2109 = vmatmul.mubr.msk.f32.gmra.mrb[6].mxu0 %vm215_vm0, %v1448_v47 }
 0x16d   : > { %v2031_v48 = vpop.f32.mrb[0].mxu1 }
 0x16e   : > { %v793_v49 = vpop.f32.mrb[1].mxu1 }
 0x171   : > { %v2034_v50 = vpop.f32.mrb[2].mxu1 }
 0x172   : > { %v803_v51 = vpop.f32.mrb[3].mxu1 }
 0x177   : > { %v2101_v52 = vpop.f32.mrb[0].mxu0 }
 0x178   : > { %v2113_v53 = vadd.f32 %v2101_v52, %v2031_v48  ;;  %v1544_v54 = vpop.f32.mrb[1].mxu0 }
 0x179   : > { %v2114_v55 = vadd.f32 %v1544_v54, %v793_v49 }
 0x17a   : > { %1593 = vst.msk [vmem:[%s2792_s18 + $0x8] sm:$0xff] %vm1591_vm4, %v2113_v53  ;;  %v1601_v56 = vsel %vm1591_vm4, %v2113_v53, 0.0  ;;  %v1623_v57 = vmul.f32 %v2113_v53, %v2113_v53 }
 0x17b   : > { %1592 = vst.msk [vmem:[%s2792_s18] sm:$0xff] %vm1591_vm4, %v2114_v55  ;;  %v1600_v58 = vsel %vm1591_vm4, %v2114_v55, 0.0  ;;  %v1622_v59 = vmul.f32 %v2114_v55, %v2114_v55  ;;  %v2104_v60 = vpop.f32.mrb[2].mxu0 }
 0x17c   : > { %v1631_v61 = vsel %vm1591_vm4, %v1623_v57, 0.0  ;;  %v1602_v62 = vadd.f32 %v1601_v56, %v1600_v58  ;;  %v2115_v63 = vadd.f32 %v2104_v60, %v2034_v50  ;;  %v1554_v0 = vpop.f32.mrb[3].mxu0 }
 0x17d   : > { %v1630_v1 = vsel %vm1591_vm4, %v1622_v59, 0.0  ;;  %v2116_v2 = vadd.f32 %v1554_v0, %v803_v51  ;;  %v2051_v3 = vpop.f32.mrb[4].mxu1 }
 0x17e   : > { %v1632_v4 = vadd.f32 %v1631_v61, %v1630_v1  ;;  %1595 = vst.msk [vmem:[%s2792_s18 + $0x18] sm:$0xff] %vm1591_vm4, %v2115_v63  ;;  %v963_v5 = vpop.f32.mrb[5].mxu1  ;;  %v1625_v6 = vmul.f32 %v2115_v63, %v2115_v63  ;;  %v1605_v13 = vsel %vm1591_vm4, %v2115_v63, 0.0 }
 0x17f   : > { %1594 = vst.msk [vmem:[%s2792_s18 + $0x10] sm:$0xff] %vm1591_vm4, %v2116_v2  ;;  %v1603_v7 = vsel %vm1591_vm4, %v2116_v2, 0.0  ;;  %v1624_v8 = vmul.f32 %v2116_v2, %v2116_v2  ;;  %v2107_v9 = vpop.f32.mrb[4].mxu0 }
 0x180   : > { %v1604_v10 = vadd.f32 %v1603_v7, %v1602_v62  ;;  %v2117_v11 = vadd.f32 %v2107_v9, %v2051_v3  ;;  %v1564_v12 = vpop.f32.mrb[5].mxu0  ;;  %v1635_v20 = vsel %vm1591_vm4, %v1625_v6, 0.0 }
 0x181   : > { %v1633_v14 = vsel %vm1591_vm4, %v1624_v8, 0.0  ;;  %v2118_v15 = vadd.f32 %v1564_v12, %v963_v5  ;;  %v2054_v16 = vpop.f32.mrb[6].mxu1 }
 0x182   : > { %v1634_v17 = vadd.f32 %v1633_v14, %v1632_v4  ;;  %1597 = vst.msk [vmem:[%s2792_s18 + $0x28] sm:$0xff] %vm1591_vm4, %v2117_v11  ;;  %v1606_v18 = vadd.f32 %v1605_v13, %v1604_v10  ;;  %v973_v19 = vpop.f32.mrb[7].mxu1  ;;  %v1627_v21 = vmul.f32 %v2117_v11, %v2117_v11  ;;  %v1609_v29 = vsel %vm1591_vm4, %v2117_v11, 0.0 }
 0x183   : > { %1596 = vst.msk [vmem:[%s2792_s18 + $0x20] sm:$0xff] %vm1591_vm4, %v2118_v15  ;;  %v1607_v22 = vsel %vm1591_vm4, %v2118_v15, 0.0  ;;  %v1626_v23 = vmul.f32 %v2118_v15, %v2118_v15  ;;  %v2110_v24 = vpop.f32.mrb[6].mxu0 }
 0x184   : > { %v1608_v25 = vadd.f32 %v1607_v22, %v1606_v18  ;;  %v1636_v26 = vadd.f32 %v1635_v20, %v1634_v17  ;;  %v2119_v27 = vadd.f32 %v2110_v24, %v2054_v16  ;;  %v1574_v28 = vpop.f32.mrb[7].mxu0  ;;  %v1639_v34 = vsel %vm1591_vm4, %v1627_v21, 0.0 }
 0x185   : > { %v1637_v30 = vsel %vm1591_vm4, %v1626_v23, 0.0  ;;  %v2120_v31 = vadd.f32 %v1574_v28, %v973_v19 }
 0x186   : > { %v1638_v32 = vadd.f32 %v1637_v30, %v1636_v26  ;;  %1599 = vst.msk [vmem:[%s2792_s18 + $0x38] sm:$0xff] %vm1591_vm4, %v2119_v27  ;;  %v1610_v33 = vadd.f32 %v1609_v29, %v1608_v25  ;;  %v1629_v35 = vmul.f32 %v2119_v27, %v2119_v27 }
 0x187   : > { %1598 = vst.msk [vmem:[%s2792_s18 + $0x30] sm:$0xff] %vm1591_vm4, %v2120_v31  ;;  %v1611_v36 = vsel %vm1591_vm4, %v2120_v31, 0.0  ;;  %v1628_v37 = vmul.f32 %v2120_v31, %v2120_v31 }
 0x188   : > { %v1612_v38 = vadd.f32 %v1611_v36, %v1610_v33  ;;  %v1640_v39 = vadd.f32 %v1639_v34, %v1638_v32 }
 0x189   : > { %2317 = shalt.err (!%p2314_p7)
}
 0x18a   : > { %s2318_s23 = scalar_lea.hbm %s2820_s5, 1024  ;;  %s2322_s7 = scalar_lea.hbm %s2912_s2, 2048 }
 0x18b   : > { %p2319_p9 = scmp.ne.s32.totalorder %s2820_s5, %s2318_s23  ;;  %p2323_p5 = scmp.lt.u32.totalorder %s2820_s5, %s2912_s2 }
 0x18c   : > { %p2324_p11 = scmp.lt.u32.totalorder %s2322_s7, %s2318_s23  ;;  %p2326_p4 = scmp.lt.u32.totalorder %s2318_s23, %s2820_s5 }
 0x18d   : > { %p2320_p2 = pnand %p2319_p9, %p2530_p12 }
 0x18e   : > { %p2325_p1 = por %p2324_p11, %p2323_p5 }
 0x18f   : > { %p2321_p0 = pneg %p2320_p2 }
 0x190   : > { %p2327_p6 = por %p2326_p4, %p2325_p1 }
 0x192   : > { %p2328_p8 = pnand %p2327_p6, %p2321_p0 }
 0x194   : > { %2331 = shalt.err (!%p2328_p8)
}
 0x195   : > { %s2416_s18 = smov 128   ;;  %s2417_s20 = smov 8   ;;  %v1613_v40 = vsel %vm1591_vm4, %v2119_v27, 0.0  ;;  %v1641_v41 = vsel %vm1591_vm4, %v1628_v37, 0.0  ;;  %v1643_v44 = vsel %vm1591_vm4, %v1629_v35, 0.0  ;;  %vm1652_vm5 = vcmask 57344  }
 0x196   : > { %2183 = dma.vmem_to_hbm [thread:$0]  (%p2530_p12), %s2822_s4, 1024, %s2820_s5, %s1656_s10, %s2416_s18, %s2416_s18, %s2417_s20   ;;  %v1614_v42 = vadd.f32 %v1613_v40, %v1612_v38  ;;  %v1642_v43 = vadd.f32 %v1641_v41, %v1640_v39 }
 0x197   : > { %s1813_s25 = sshll.u32 %s2578_s6, 1  ;;  %s1899_s4 = sshll.u32 %s2460_s16, 5 }
 0x198   : > { %v1615_v45 = vsel %vm1591_vm4, %v1614_v42, 0.0  ;;  %v1644_v46 = vadd.f32 %v1643_v44, %v1642_v43  ;;  %s214_s26 = scalar_lea.vmem [#allocation9], %s1813_s25  ;;  %s2866_s27 = scalar_lea.hbm %s2913_s3, %s1899_s4 }
 0x199   : > { %v1616_v47 = vrot.slane %v1615_v45, 4  ;;  %s1690_s5 = sshll.u32 %s214_s26, 4  ;;  %s1661_s28 = scalar_lea.sflag [#allocation10], %s2578_s6  ;;  %s2868_s5 = int_to_ptr.vmem [resolvable:$true] %s1690_s5 }
 0x19a   : > { %v1645_v48 = vsel %vm1591_vm4, %v1644_v46, 0.0  ;;  %s2332_s29 = scalar_lea.vmem %s2868_s5, 32  ;;  %s2418_s16 = smov [#allocation9]  }
 0x19b   : > { %v1617_v49 = vadd.f32 %v1616_v47, %v1615_v45  ;;  %v1646_v50 = vrot.slane %v1645_v48, 4  ;;  %p2333_p10 = scmp.ne.s32.totalorder %s2868_s5, %s2332_s29  ;;  %s2336_s23 = sshll.u32 %s2418_s16, 4  ;;  %s2337_s23 = int_to_ptr.vmem [resolvable:$false] %s2336_s23 }
 0x19c   : > { %s2338_s30 = scalar_lea.vmem %s2337_s23, 64  ;;  %p2339_p7 = scmp.lt.s32.totalorder %s2868_s5, %s2337_s23 }
 0x19d   : > { %v1618_v51 = vrot.slane %v1617_v49, 2  ;;  %v1647_v52 = vadd.f32 %v1646_v50, %v1645_v48  ;;  %p2334_p13 = pnand %p2333_p10, %p2530_p12  ;;  %p2340_p9 = scmp.lt.s32.totalorder %s2338_s30, %s2332_s29 }
 0x19f   : > { %v1619_v53 = vadd.f32 %v1618_v51, %v1617_v49  ;;  %v1648_v54 = vrot.slane %v1647_v52, 2  ;;  %p2335_p3 = pneg %p2334_p13  ;;  %p2341_p2 = por %p2340_p9, %p2339_p7 }
 0x1a1   : > { %v1620_v55 = vrot.slane %v1619_v53, 1  ;;  %v1649_v56 = vadd.f32 %v1648_v54, %v1647_v52  ;;  %p2342_p0 = pnand %p2341_p2, %p2335_p3 }
 0x1a3   : > { %v1621_v57 = vadd.f32 %v1620_v55, %v1619_v53  ;;  %v1650_v58 = vrot.slane %v1649_v56, 1 }
 0x1a5   : > { %v1651_v59 = vadd.f32 %v1650_v58, %v1649_v56  ;;  %1653 = vst.msk [vmem:[%s214_s26] sm:$0x1] %vm1652_vm5, %v1621_v57 }
 0x1a7   : > { %1654 = vst.msk [vmem:[%s214_s26 + $0x1] sm:$0x1] %vm1652_vm5, %v1651_v59 }
 0x1a8   : > { %2345 = shalt.err (!%p2342_p0)
}
 0x1a9   : > { %s2346_s6 = scalar_lea.hbm %s2866_s27, 32  ;;  %s2350_s8 = scalar_lea.hbm %s2913_s3, 64 }
 0x1aa   : > { %p2347_p5 = scmp.ne.s32.totalorder %s2866_s27, %s2346_s6  ;;  %p2351_p4 = scmp.lt.u32.totalorder %s2866_s27, %s2913_s3 }
 0x1ab   : > { %p2352_p6 = scmp.lt.u32.totalorder %s2350_s8, %s2346_s6  ;;  %p2354_p10 = scmp.lt.u32.totalorder %s2346_s6, %s2866_s27 }
 0x1ac   : > { %p2348_p11 = pnand %p2347_p5, %p2530_p12 }
 0x1ad   : > { %p2353_p8 = por %p2352_p6, %p2351_p4 }
 0x1ae   : > { %p2349_p1 = pneg %p2348_p11 }
 0x1af   : > { %p2355_p13 = por %p2354_p10, %p2353_p8 }
 0x1b1   : > { %p2356_p3 = pnand %p2355_p13, %p2349_p1 }
 0x1b3   : > { %2359 = shalt.err (!%p2356_p3)
}
 0x1b4   : > { %2184 = dma.vmem_to_hbm [thread:$0]  (%p2530_p12), %s2868_s5, 32, %s2866_s27, %s1661_s28  }
 0x1b5 PF: > { %s1702_s20 = sand.u32 1, %s2394_s12   ;;  %p2928_p7 = scmp.ne.s32.totalorder %s2918_s19, 0 }
 0x1b6   : > { %p2929_p9 = scmp.ge.s32.totalorder %s2406_s15, 2  ;;  %s1703_s25 = scalar_lea.sflag [#allocation5], %s1702_s20 }
 0x1b8   : > { %p2196_p2 = pnand %p2929_p9, %p2928_p7 }
 0x1ba   : > { %2385 = dma.done.wait (!%p2196_p2), %s1703_s25, 1024  }
 0x1bb   : > { %2387 = vsyncadd (!%p2196_p2), %s1703_s25, 4294966272  ;;  %s1712_s4 = scalar_lea.sflag [#allocation10], %s1702_s20 }
 0x1bc   : > { %2389 = dma.done.wait (!%p2196_p2), %s1712_s4, 32  }
 0x1bd   : > { %2391 = vsyncadd (!%p2196_p2), %s1712_s4, 4294967264  ;;  %p21_p12 = scmp.ge.s32.totalorder %s2495_s24, 4   ;;  %s2930_s12 = smov %s2398_s13 }
 0x1be   : > { %s2931_s13 = smov %s2402_s14  ;;  %s2932_s14 = smov %s2526_s17 }
 0x1bf   : > { %s2933_s15 = smov %s2495_s24  ;;  %23 = sbr.rel (!%p21_p12) target bundleno = 8 (0x8), region = 105 }
 0x1c6   :  { %1717 = vsyncpa [#allocation4], 1 }
 0x1c7   :  { %1719 = vsyncpa [#allocation4 + $0x1], 1 }
 0x1c8   :  { %1720 = vsyncpa [#allocation7], 1 }
 0x1c9   :  { %1721 = vsyncpa [#allocation5], 1 }
 0x1ca   :  { %1723 = vsyncpa [#allocation5 + $0x1], 1 }
 0x1cb   :  { %1724 = vsyncpa [#allocation10], 1 }
 0x1cc   :  { %1726 = vsyncpa [#allocation10 + $0x1], 1 }

</bundles_post_ra>
